<compile_context>
chip_gen: v7x
topology: tpu7x:2x2x1
jax: 0.10.0
libtpu: 0.0.40
codegen_flags: <defaults>
</compile_context>

<pallas_src>
import jax
import jax.numpy as jnp
from jax import lax
from jax.experimental import pallas as pl
from jax.experimental.pallas import tpu as pltpu


LANES = 128
SUB_ROWS = 8                       # one (8,128) sub-block = 1024 elements
SUB_ELEMS = SUB_ROWS * LANES
MAX_TILE_ROWS = 4096               # 4096x128 f32 = 2 MiB / buffer (1 MiB bf16)


# ---------------------------------------------------------------------------
# Fused ||p1 - p2||^2 kernel: one pipelined sweep, net tile resident over pnets
# ---------------------------------------------------------------------------
def _diff_sumsq_kernel(a_ref, b_ref, out_ref):
    """Per-(8,128)-sub-block sum((a - b)**2) for one (tile, pnet) grid step."""
    a = a_ref[...].astype(jnp.float32)          # upcast in-kernel (bf16 slabs)
    b = b_ref[...].astype(jnp.float32)
    d = a - b
    g = out_ref.shape[-1]                       # = tile_rows // 8
    d2 = (d * d).reshape(g, SUB_ROWS, LANES)    # free reshape: groups of 8 rows
    s = jnp.sum(d2, axis=1)                     # (g, 128) sublane-group reduce
    s = jnp.sum(s, axis=1)                      # (g,)     lane reduce (XLU)
    out_ref[...] = s.reshape(1, 1, g)


def _pad_param_subblocks(p, dtype):
    """Flatten + zero-pad one parameter to whole (8,128) sub-blocks (native dtype)."""
    flat = p.reshape(-1).astype(dtype)          # native dtype, no f32 upcast
    n = flat.shape[0]
    n_sub = -(-n // SUB_ELEMS)
    flat = jnp.pad(flat, (0, n_sub * SUB_ELEMS - n))
    return flat.reshape(n_sub * SUB_ROWS, LANES), n_sub


def _build_slabs(net_params, pnets_params, dtype):
    """a = padded net (once); b = all pnets back-to-back with identical row layout."""
    n_params = len(net_params)

    a_parts, sub_pids = [], []
    for pid, p in enumerate(net_params):
        blk, n_sub = _pad_param_subblocks(p, dtype)
        a_parts.append(blk)
        sub_pids.extend([pid] * n_sub)
    rows = sum(part.shape[0] for part in a_parts)

    # Tile rows: multiple of 1024 (so g = tile_rows//8 is a multiple of 128),
    # capped at MAX_TILE_ROWS; pad the whole slab once to a multiple of it.
    tile_rows = min(MAX_TILE_ROWS, -(-rows // 1024) * 1024)
    total_rows = -(-rows // tile_rows) * tile_rows
    pad_rows = total_rows - rows

    a = jnp.concatenate(a_parts, axis=0)
    if pad_rows:
        a = jnp.pad(a, ((0, pad_rows), (0, 0)))

    b_slabs = []
    for pnet in pnets_params:
        assert len(pnet) == n_params, "pnet parameter count mismatch with net"
        parts = []
        for p1, p2 in zip(net_params, pnet):
            assert p1.shape == p2.shape, "pnet parameter shape mismatch with net"
            blk, _ = _pad_param_subblocks(p2, dtype)
            parts.append(blk)
        bs = jnp.concatenate(parts, axis=0)
        if pad_rows:
            bs = jnp.pad(bs, ((0, pad_rows), (0, 0)))
        b_slabs.append(bs)
    b = jnp.concatenate(b_slabs, axis=0)

    # Sub-block -> net-parameter-id table (trailing padded sub-blocks are all
    # zero in both slabs, so mapping them to param 0 adds exactly 0).
    n_tiles = total_rows // tile_rows
    g = tile_rows // SUB_ROWS
    sub_pids = sub_pids + [0] * (n_tiles * g - len(sub_pids))
    return a, b, jnp.asarray(sub_pids, dtype=jnp.int32), tile_rows, n_tiles


def _fused_diff_sumsq(a, b, tile_rows, n_tiles, n_pnets):
    """2-D grid (tile 'parallel', pnet 'arbitrary'); a-tile resident over pnets."""
    g = tile_rows // SUB_ROWS
    out = pl.pallas_call(
        _diff_sumsq_kernel,
        out_shape=jax.ShapeDtypeStruct((n_tiles * n_pnets, 1, g), jnp.float32),
        grid=(n_tiles, n_pnets),
        in_specs=[
            # net tile: block index independent of p -> kept resident, no re-DMA
            pl.BlockSpec((tile_rows, LANES), lambda t, p: (t, 0)),
            # pnet tile: pnet p's copy of tile t
            pl.BlockSpec((tile_rows, LANES), lambda t, p: (p * n_tiles + t, 0)),
        ],
        out_specs=pl.BlockSpec((1, 1, g), lambda t, p: (t * n_pnets + p, 0, 0)),
        compiler_params=pltpu.CompilerParams(
            dimension_semantics=("parallel", "arbitrary")),
    )(a, b)
    return out.reshape(n_tiles, n_pnets, g)


# ---------------------------------------------------------------------------
# Cross-entropy (log-softmax + NLL), in-kernel masked sum over batch tiles
# ---------------------------------------------------------------------------
def _ce_kernel(logits_ref, labels_ref, out_ref):
    @pl.when(pl.program_id(0) == 0)
    def _():
        out_ref[...] = jnp.zeros_like(out_ref)

    logits = logits_ref[...].astype(jnp.float32)           # (TB, C)
    labels = labels_ref[...]                                # (TB, 1) int32
    m = jnp.max(logits, axis=-1, keepdims=True)
    lse = jnp.log(jnp.sum(jnp.exp(logits - m), axis=-1, keepdims=True)) + m
    col = lax.broadcasted_iota(jnp.int32, logits.shape, 1)
    onehot = (col == labels).astype(jnp.float32)            # padded label -1 -> 0
    true_logit = jnp.sum(onehot * logits, axis=-1, keepdims=True)
    valid = (labels >= 0).astype(jnp.float32)                # mask padded rows
    loss = (lse - true_logit) * valid                        # (TB, 1)
    # Accumulate the tile's loss-sum into the resident output block.
    out_ref[...] = out_ref[...] + jnp.sum(loss)


def cross_entropy(logits, labels):
    B, C = logits.shape
    tb = min(128, -(-B // 8) * 8)            # batch tile, multiple of 8
    b_pad = -(-B // tb) * tb
    logits_p = jnp.pad(logits, ((0, b_pad - B), (0, 0)))     # native dtype
    labels_p = jnp.pad(labels.astype(jnp.int32), (0, b_pad - B),
                       constant_values=-1).reshape(b_pad, 1)
    out = pl.pallas_call(
        _ce_kernel,
        out_shape=jax.ShapeDtypeStruct((8, 128), jnp.float32),
        grid=(b_pad // tb,),
        in_specs=[pl.BlockSpec((tb, C), lambda i: (i, 0)),
                  pl.BlockSpec((tb, 1), lambda i: (i, 0))],
        out_specs=pl.BlockSpec((8, 128), lambda i: (0, 0)),   # resident accumulator
        compiler_params=pltpu.CompilerParams(
            dimension_semantics=("arbitrary",)),
    )(logits_p, labels_p)
    return out[0, 0] / B


# ---------------------------------------------------------------------------
# L2.forward equivalent
# ---------------------------------------------------------------------------
def l2_forward(outputs, labels, net_params, pnets_params, lam):
    ce = cross_entropy(outputs, labels)
    if len(pnets_params) == 0 or len(net_params) == 0:
        return ce

    # Slabs stay in the parameters' native floating dtype (bf16/f16 kept as-is,
    # everything else runs as f32); kernel upcasts and accumulates in f32.
    all_dtypes = [p.dtype for p in net_params] + \
                 [p.dtype for pn in pnets_params for p in pn]
    slab_dtype = jnp.result_type(*all_dtypes)
    if slab_dtype not in (jnp.dtype(jnp.bfloat16), jnp.dtype(jnp.float16)):
        slab_dtype = jnp.dtype(jnp.float32)

    n_pnets = len(pnets_params)
    n_params = len(net_params)
    a, b, sub_pids, tile_rows, n_tiles = _build_slabs(
        net_params, pnets_params, slab_dtype)
    g = tile_rows // SUB_ROWS

    sub_ssq = _fused_diff_sumsq(a, b, tile_rows, n_tiles, n_pnets)  # (T, P, g)

    # Segment-sum sub-block partials into one sum-of-squares per (pnet, param).
    pair_ids = (jnp.arange(n_pnets, dtype=jnp.int32).reshape(1, n_pnets, 1)
                * n_params
                + sub_pids.reshape(n_tiles, 1, g))                  # (T, P, g)
    pair_ssq = jax.ops.segment_sum(sub_ssq.ravel(), pair_ids.ravel(),
                                   num_segments=n_pnets * n_params)

    # NaN-safe sqrt (subgradient 0 at ssq == 0, matching PyTorch's behavior).
    safe = jnp.where(pair_ssq > 0, pair_ssq, 1.0)
    norms = jnp.where(pair_ssq > 0, jnp.sqrt(safe), 0.0)
    reg = jnp.sum(norms)
    return ce + jnp.float32(lam) * reg


if __name__ == "__main__":
    key = jax.random.PRNGKey(0)
    B, C, H = 8, 16, 32                 # batch, num classes, hidden dim
    lam = 0.1

    k = jax.random.split(key, 8)
    outputs = jax.random.normal(k[0], (B, C), dtype=jnp.float32)   # logits
    labels = jax.random.randint(k[1], (B,), 0, C, dtype=jnp.int32)

    # "net" parameters (e.g. a linear classifier: weight [C, H], bias [C])
    net_params = [
        jax.random.normal(k[2], (C, H), dtype=jnp.float32) * 0.05,
        jax.random.normal(k[3], (C,), dtype=jnp.float32) * 0.05,
    ]
    # two "pnets" with identically-shaped parameters
    pnets_params = [
        [jax.random.normal(k[4], (C, H), dtype=jnp.float32) * 0.05,
         jax.random.normal(k[5], (C,), dtype=jnp.float32) * 0.05],
        [jax.random.normal(k[6], (C, H), dtype=jnp.float32) * 0.05,
         jax.random.normal(k[7], (C,), dtype=jnp.float32) * 0.05],
    ]

    loss = jax.jit(l2_forward)(outputs, labels, net_params, pnets_params, lam)
    jax.block_until_ready(loss)

    # quick sanity check against pure-JAX reference
    def ref_loss():
        lse = jax.scipy.special.logsumexp(outputs, axis=-1)
        ce = jnp.mean(lse - outputs[jnp.arange(B), labels])
        reg = 0.0
        for pnet in pnets_params:
            for p1, p2 in zip(net_params, pnet):
                reg = reg + jnp.sqrt(jnp.sum((p1 - p2) ** 2))
        return ce + lam * reg

    assert jnp.allclose(loss, ref_loss(), rtol=1e-5, atol=1e-5)
    print("KERNEL_OK")
</pallas_src>

<mosaic_0001>
module attributes {stable_mosaic.version = 11 : i64} {
  func.func private @main(%arg0: i32) attributes {dimension_semantics = [#tpu.dimension_semantics<core_parallel>], iteration_bounds = array<i64: 2>, tpu.core_type = #tpu.core_type<sc_scalar_subcore>, window_params = []} {
    return
  }
}

module attributes {stable_mosaic.version = 11 : i64} {
  func.func private @main(%arg0: i32) attributes {dimension_semantics = [#tpu.dimension_semantics<core_parallel>], iteration_bounds = array<i64: 2>, tpu.core_type = #tpu.core_type<sc_scalar_subcore>, window_params = []} {
    return
  }
}

module attributes {stable_mosaic.version = 11 : i64} {
  func.func @_diff_sumsq_kernel(%arg0: i32, %arg1: i32, %arg2: memref<1024x128xf32, #tpu.memory_space<vmem>>, %arg3: memref<1024x128xf32, #tpu.memory_space<vmem>>, %arg4: memref<1x1x128xf32, #tpu.memory_space<vmem>>) attributes {dimension_semantics = [#tpu.dimension_semantics<parallel>, #tpu.dimension_semantics<arbitrary>], iteration_bounds = array<i64: 1, 2>, scalar_prefetch = 0 : i64, scratch_operands = 0 : i64, tpu.core_type = #tpu.core_type<tc>, window_params = [{transform_indices = @transform_0, window_bounds = array<i64: 1024, 128>}, {transform_indices = @transform_1, window_bounds = array<i64: 1024, 128>}, {transform_indices = @transform_2, window_bounds = array<i64: 1, 1, 128>}]} {
    %c0 = arith.constant 0 : index
    %c0_0 = arith.constant 0 : index
    %0 = vector.load %arg2[%c0, %c0_0] : memref<1024x128xf32, #tpu.memory_space<vmem>>, vector<1024x128xf32>
    %c0_1 = arith.constant 0 : index
    %c0_2 = arith.constant 0 : index
    %1 = vector.load %arg3[%c0_1, %c0_2] : memref<1024x128xf32, #tpu.memory_space<vmem>>, vector<1024x128xf32>
    %2 = arith.subf %0, %1 : vector<1024x128xf32>
    %3 = arith.mulf %2, %2 : vector<1024x128xf32>
    %4 = vector.shape_cast %3 : vector<1024x128xf32> to vector<128x8x128xf32>
    %cst = arith.constant dense<0.000000e+00> : vector<128x128xf32>
    %5 = vector.multi_reduction <add>, %4, %cst [1] : vector<128x8x128xf32> to vector<128x128xf32>
    %cst_3 = arith.constant dense<0.000000e+00> : vector<128xf32>
    %6 = vector.multi_reduction <add>, %5, %cst_3 [1] : vector<128x128xf32> to vector<128xf32>
    %7 = vector.shape_cast %6 : vector<128xf32> to vector<1x1x128xf32>
    %c0_4 = arith.constant 0 : index
    %c0_5 = arith.constant 0 : index
    %c0_6 = arith.constant 0 : index
    %8 = vector.load %arg4[%c0_4, %c0_5, %c0_6] : memref<1x1x128xf32, #tpu.memory_space<vmem>>, vector<1x1x128xf32>
    tpu.vector_store %arg4[%c0_4, %c0_5, %c0_6], %7 {strides = array<i32>} : memref<1x1x128xf32, #tpu.memory_space<vmem>>, vector<1x1x128xf32>,
    return
  }
  func.func @transform_0(%arg0: i32, %arg1: i32) -> (i32, i32) {
    %c0_i32 = arith.constant 0 : i32
    %c0_i32_0 = arith.constant 0 : i32
    return %arg0, %c0_i32 : i32, i32
  }
  func.func @transform_1(%arg0: i32, %arg1: i32) -> (i32, i32) {
    %c1_i32 = arith.constant 1 : i32
    %0 = arith.muli %arg1, %c1_i32 : i32
    %1 = arith.addi %0, %arg0 : i32
    %c0_i32 = arith.constant 0 : i32
    %c0_i32_0 = arith.constant 0 : i32
    return %1, %c0_i32 : i32, i32
  }
  func.func @transform_2(%arg0: i32, %arg1: i32) -> (i32, i32, i32) {
    %c2_i32 = arith.constant 2 : i32
    %0 = arith.muli %arg0, %c2_i32 : i32
    %1 = arith.addi %0, %arg1 : i32
    %c0_i32 = arith.constant 0 : i32
    %c0_i32_0 = arith.constant 0 : i32
    %c0_i32_1 = arith.constant 0 : i32
    return %1, %c0_i32, %c0_i32_0 : i32, i32, i32
  }
}

module attributes {stable_mosaic.version = 11 : i64} {
  func.func @_ce_kernel(%arg0: i32, %arg1: memref<8x16xf32, #tpu.memory_space<vmem>>, %arg2: memref<8x1xi32, #tpu.memory_space<vmem>>, %arg3: memref<8x128xf32, #tpu.memory_space<vmem>>) attributes {dimension_semantics = [#tpu.dimension_semantics<arbitrary>], iteration_bounds = array<i64: 1>, scalar_prefetch = 0 : i64, scratch_operands = 0 : i64, tpu.core_type = #tpu.core_type<tc>, window_params = [{transform_indices = @transform_0, window_bounds = array<i64: 8, 16>}, {transform_indices = @transform_1, window_bounds = array<i64: 8, 1>}, {pipeline_mode = #tpu.pipeline_mode<synchronous>, transform_indices = @transform_2, window_bounds = array<i64: 8, 128>}]} {
    %c0_i32 = arith.constant 0 : i32
    %0 = arith.cmpi eq, %arg0, %c0_i32 : i32
    %1 = arith.extui %0 : i1 to i32
    %c0_i32_0 = arith.constant 0 : i32
    %2 = arith.cmpi ne, %1, %c0_i32_0 : i32
    scf.if %2 {
      %cst_12 = arith.constant 0.000000e+00 : f32
      %36 = vector.broadcast %cst_12 : f32 to vector<8x128xf32>
      %c0_13 = arith.constant 0 : index
      %c0_14 = arith.constant 0 : index
      %37 = vector.load %arg3[%c0_13, %c0_14] : memref<8x128xf32, #tpu.memory_space<vmem>>, vector<8x128xf32>
      tpu.vector_store %arg3[%c0_13, %c0_14], %36 {strides = array<i32>} : memref<8x128xf32, #tpu.memory_space<vmem>>, vector<8x128xf32>,
    } else {
    }
    %c0 = arith.constant 0 : index
    %c0_1 = arith.constant 0 : index
    %3 = vector.load %arg1[%c0, %c0_1] : memref<8x16xf32, #tpu.memory_space<vmem>>, vector<8x16xf32>
    %c0_2 = arith.constant 0 : index
    %c0_3 = arith.constant 0 : index
    %4 = vector.load %arg2[%c0_2, %c0_3] : memref<8x1xi32, #tpu.memory_space<vmem>>, vector<8x1xi32>
    %cst = arith.constant dense<0xFF800000> : vector<8xf32>
    %5 = vector.multi_reduction <maximumf>, %3, %cst [1] : vector<8x16xf32> to vector<8xf32>
    %6 = vector.shape_cast %5 : vector<8xf32> to vector<8x1xf32>
    %7 = vector.broadcast %6 : vector<8x1xf32> to vector<8x16xf32>
    %8 = arith.subf %3, %7 : vector<8x16xf32>
    %9 = math.exp %8 : vector<8x16xf32>
    %cst_4 = arith.constant dense<0.000000e+00> : vector<8xf32>
    %10 = vector.multi_reduction <add>, %9, %cst_4 [1] : vector<8x16xf32> to vector<8xf32>
    %11 = vector.shape_cast %10 : vector<8xf32> to vector<8x1xf32>
    %12 = math.log %11 : vector<8x1xf32>
    %13 = arith.addf %12, %6 : vector<8x1xf32>
    %14 = tpu.iota {dimensions = array<i32: 1>} : vector<8x16xi32>
    %15 = vector.broadcast %4 : vector<8x1xi32> to vector<8x16xi32>
    %16 = arith.cmpi eq, %14, %15 : vector<8x16xi32>
    %17 = arith.extui %16 : vector<8x16xi1> to vector<8x16xi32>
    %18 = arith.sitofp %17 : vector<8x16xi32> to vector<8x16xf32>
    %19 = arith.mulf %18, %3 : vector<8x16xf32>
    %cst_5 = arith.constant dense<0.000000e+00> : vector<8xf32>
    %20 = vector.multi_reduction <add>, %19, %cst_5 [1] : vector<8x16xf32> to vector<8xf32>
    %21 = vector.shape_cast %20 : vector<8xf32> to vector<8x1xf32>
    %c0_i32_6 = arith.constant 0 : i32
    %22 = vector.broadcast %c0_i32_6 : i32 to vector<8x1xi32>
    %23 = arith.cmpi sge, %4, %22 : vector<8x1xi32>
    %24 = arith.extui %23 : vector<8x1xi1> to vector<8x1xi32>
    %25 = arith.sitofp %24 : vector<8x1xi32> to vector<8x1xf32>
    %26 = arith.subf %13, %21 : vector<8x1xf32>
    %27 = arith.mulf %26, %25 : vector<8x1xf32>
    %c0_7 = arith.constant 0 : index
    %c0_8 = arith.constant 0 : index
    %28 = vector.load %arg3[%c0_7, %c0_8] : memref<8x128xf32, #tpu.memory_space<vmem>>, vector<8x128xf32>
    %29 = vector.shape_cast %27 : vector<8x1xf32> to vector<1x8x1xf32>
    %cst_9 = arith.constant dense<0.000000e+00> : vector<1xf32>
    %30 = vector.multi_reduction <add>, %29, %cst_9 [1, 2] : vector<1x8x1xf32> to vector<1xf32>
    %31 = vector.shape_cast %30 : vector<1xf32> to vector<1x1x1xf32>
    %32 = vector.extract %31[0, 0, 0] : f32 from vector<1x1x1xf32>
    %33 = vector.broadcast %32 : f32 to vector<8x128xf32>
    %34 = arith.addf %28, %33 : vector<8x128xf32>
    %c0_10 = arith.constant 0 : index
    %c0_11 = arith.constant 0 : index
    %35 = vector.load %arg3[%c0_10, %c0_11] : memref<8x128xf32, #tpu.memory_space<vmem>>, vector<8x128xf32>
    tpu.vector_store %arg3[%c0_10, %c0_11], %34 {strides = array<i32>} : memref<8x128xf32, #tpu.memory_space<vmem>>, vector<8x128xf32>,
    return
  }
  func.func @transform_0(%arg0: i32) -> (i32, i32) {
    %c0_i32 = arith.constant 0 : i32
    %c0_i32_0 = arith.constant 0 : i32
    return %arg0, %c0_i32 : i32, i32
  }
  func.func @transform_1(%arg0: i32) -> (i32, i32) {
    %c0_i32 = arith.constant 0 : i32
    %c0_i32_0 = arith.constant 0 : i32
    return %arg0, %c0_i32 : i32, i32
  }
  func.func @transform_2(%arg0: i32) -> (i32, i32) {
    %c0_i32 = arith.constant 0 : i32
    %c0_i32_0 = arith.constant 0 : i32
    %c0_i32_1 = arith.constant 0 : i32
    return %c0_i32, %c0_i32_0 : i32, i32
  }
}

</mosaic_0001>

<bundles_post_ra>
// kernel: l2_forward.2
= control target key start
LH: loop header
LB: loop body
LE: loop exit
PB: predicated region body
PF: predicated region fallthrough
CT: control target
= control target key end

     0   :  { %vm18_vm0 = vcmask 130048   ;;  %v78_v1 = vmov 0   ;;  %v31_v6 = vlaneseq  ;;  %v79_v10 = vmov 0.0   ;;  %s107_s0 = inlined_call_operand.vmem [shape: f32[8,16], index: 0, kind: input, shape index: {}]   ;;  %s108_s1 = inlined_call_operand.vmem [shape: s32[8,1], index: 1, kind: input, shape index: {}]   ;;  %s109_s2 = inlined_call_operand.vmem [shape: f32[8,128], index: 2, kind: output, shape index: {}]  }
   0x1   :  { %v16_v0 = vld [vmem:[%s107_s0] sm:$0xff]  ;;  %73 = vset.pattern.permute.xlu0 %v78_v1  ;;  %vm49_vm3 = vcmask 7168  }
   0x2   :  { %v19_v2 = vsel %vm18_vm0, %v16_v0, -inf  ;;  %v17_v3 = vld [vmem:[%s108_s1] sm:$0xff]  ;;  %v32_v8 = vand.u32 127, %v31_v6 }
   0x3   :  { %20 = vmax.xlane.f32.xlu0 %v19_v2  ;;  %vm43_vm2 = vcmp.ge.s32.totalorder %v17_v3, 0 }
   0x4   :  { %v68_v21 = vsel %vm43_vm2, 1.0, %v79_v10 }
  0x19   :  { %34 = vperm.xlu0 %73, %v17_v3  }
  0x90   :  { %v21_v4 = vpop.xlane.xlu0 %20 }
  0x91   :  { %v22_v5 = vsub.f32 %v16_v0, %v21_v4 }
  0x93   :  { %v23_v7 = vmul.f32 1.442695, %v22_v5 }
  0x95   :  { %74 = vpow2.f32 %v23_v7 }
  0x98   :  { %v35_v9 = vpop.permute.xlu0 %34 }
  0x99   :  { %vm36_vm1 = vcmp.eq.s32.totalorder %v32_v8, %v35_v9 }
  0x9a   :  { %v67_v11 = vsel %vm36_vm1, 1.0, %v79_v10 }
  0x9b   :  { %v39_v12 = vmul.f32 %v67_v11, %v16_v0 }
  0x9d   :  { %v40_v15 = vsel %vm18_vm0, %v39_v12, 0.0 }
  0x9f   :  { %v75_v13 = vpop.eup %74 }
  0xa0   :  { %v25_v14 = vsel %vm18_vm0, %v75_v13, 0.0 }
  0xa1   :  { %26 = vadd.xlane.f32.xlu1 %v25_v14 }
  0xa5   :  { %41 = vadd.xlane.f32.xlu1 %v40_v15 }
 0x12e   :  { %v27_v16 = vpop.xlane.xlu1 %26 }
 0x12f   :  { %76 = vlog2.f32 %v27_v16 }
 0x132   :  { %v42_v19 = vpop.xlane.xlu1 %41 }
 0x139   :  { %v77_v17 = vpop.eup %76 }
 0x13a   :  { %v29_v18 = vmul.f32 0.6931472, %v77_v17 }
 0x13c   :  { %v30_v20 = vadd.f32 %v29_v18, %v21_v4 }
 0x13e   :  { %v46_v22 = vsub.f32 %v30_v20, %v42_v19 }
 0x140   :  { %v47_v23 = vmul.f32 %v68_v21, %v46_v22 }
 0x142   :  { %v50_v24 = vsel %vm49_vm3, %v47_v23, 0.0 }
 0x143   :  { %51 = vadd.xlane.f32.xlu1 %v50_v24 }
 0x1d0   :  { %v52_v25 = vpop.xlane.xlu1 %51 }
 0x1d1   :  { %v53_v26 = vrot.slane %v52_v25, 4 }
 0x1d3   :  { %v54_v27 = vadd.f32 %v53_v26, %v52_v25 }
 0x1d5   :  { %v55_v28 = vrot.slane %v54_v27, 2 }
 0x1d7   :  { %v56_v29 = vadd.f32 %v55_v28, %v54_v27 }
 0x1d9   :  { %v57_v30 = vrot.slane %v56_v29, 1 }
 0x1db   :  { %v58_v31 = vadd.f32 %v57_v30, %v56_v29 }
 0x1dd   :  { %69 = vpush %v58_v31 }
 0x20e   :  { %s70_s0 = spop %69 }
 0x20f   :  { %v60_v32 = vstv %s70_s0 }
 0x210   :  { %62 = vst [vmem:[%s109_s2] sm:$0xff] %v60_v32 }

// kernel: l2_forward.3
= control target key start
LH: loop header
LB: loop body
LE: loop exit
PB: predicated region body
PF: predicated region fallthrough
CT: control target
= control target key end

     0   :  { %s2047_s9 = smov 0   ;;  %s2049_s10 = smov 0   ;;  %s2747_s0 = inlined_call_operand.vmem [shape: f32[1024,128], index: 0, kind: input, shape index: {}]   ;;  %s2748_s1 = inlined_call_operand.vmem [shape: f32[2048,128], index: 1, kind: input, shape index: {}]   ;;  %s2749_s2 = inlined_call_operand.vmem [shape: f32[2,1,128], index: 2, kind: output, shape index: {}]  }
   0x1   :  { %s2051_s11 = smov 0  }
   0x2 LB: > { %s21_s12 = sadd.s32 1, %s2026_s10  ;;  %p1979_p0 = scmp.ge.s32.totalorder %s2030_s11, 1  ;;  %s2030_s11 = sphi %s2051_s11, %s12_s11   ;;  %s2026_s10 = sphi %s2049_s10, %s2751_s10   ;;  %s2022_s9 = sphi %s2047_s9, %s2750_s9  }
   0x3   : > { %p22_p1 = scmp.ge.s32.totalorder %s21_s12, 2  ;;  %p144_p2 = scmp.lt.s32.totalorder %s2030_s11, 3 }
   0x5   : > { %s2753_s12 = smov (%p22_p1, %s21_s12), 0  ;;  %p145_p3 = pnand %p1979_p0, %p144_p2 }
   0x6   : > { %s1980_s13 = sshll.u32 (!%p145_p3), %s2022_s9, 7  ;;  %v193_v0 = vld [vmem:[%s2747_s0] sm:$0xff] (!%p145_p3)  ;;  %v194_v1 = vld [vmem:[%s2747_s0 + $0x8] sm:$0xff] (!%p145_p3)  ;;  %v195_v2 = vld [vmem:[%s2747_s0 + $0x10] sm:$0xff] (!%p145_p3)  ;;  %vm1601_vm0 = vcmask (!%p145_p3), 1041409   ;;  %vm1603_vm1 = vcmask (!%p145_p3), 1042434  }
   0x7   : > { %148 = sbr.rel (%p145_p3) target bundleno = 453 (0x1c5), region = 28  ;;  %p180_p4 = scmp.lt.s32.totalorder (!%p145_p3), %s1980_s13, 255  ;;  %v196_v3 = vld [vmem:[%s2747_s0 + $0x18] sm:$0xff] (!%p145_p3)  ;;  %v197_v4 = vld [vmem:[%s2747_s0 + $0x20] sm:$0xff] (!%p145_p3)  ;;  %v198_v5 = vld [vmem:[%s2747_s0 + $0x28] sm:$0xff] (!%p145_p3)  ;;  %vm1605_vm2 = vcmask (!%p145_p3), 1043459  }
   0x8   : > { %v199_v6 = vld [vmem:[%s2747_s0 + $0x30] sm:$0xff] (!%p145_p3)  ;;  %v200_v7 = vld [vmem:[%s2747_s0 + $0x38] sm:$0xff] (!%p145_p3)  ;;  %vm1607_vm3 = vcmask (!%p145_p3), 1044484   ;;  %vm1609_vm4 = vcmask (!%p145_p3), 1045509   ;;  %vm1611_vm5 = vcmask (!%p145_p3), 1046534   ;;  %vm1613_vm6 = vcmask (!%p145_p3), 1047559  }
   0x9   : > { %v209_v62 = vld [vmem:[%s2747_s0 + $0x80] sm:$0xff] (!%p145_p3)  ;;  %vm1795_vm7 = vcmask (!%p145_p3), 130112   ;;  %vm1802_vm8 = vcmask (!%p145_p3), 195712   ;;  %vm1809_vm9 = vcmask (!%p145_p3), 261312   ;;  %vm1816_vm10 = vcmask (!%p145_p3), 326912   ;;  %p188_p5 = scmp.lt.s32.totalorder (!%p145_p3), %s2022_s9, 1 }
   0xa   : > { %vm1823_vm11 = vcmask (!%p145_p3), 392512   ;;  %vm1830_vm12 = vcmask (!%p145_p3), 458112   ;;  %vm1837_vm13 = vcmask (!%p145_p3), 523712   ;;  %vm1844_vm14 = vcmask (!%p145_p3), 589312  }
   0xb   : > { %vm1851_vm15 = vcmask (!%p145_p3), 654912  }
   0xe   : > { %s2755_s13 = smov (!%p180_p4, %s1980_s13), 255  ;;  %s2757_s9 = smov (!%p188_p5, %s2022_s9), 1 }
   0xf   : > { %s1981_s18 = sshll.u32 %s2755_s13, 3  ;;  %s190_s21 = scalar_lea.vmem %s2749_s2, %s2757_s9 }
  0x10   : > { %s2086_s27 = scalar_lea.vmem %s2748_s1, %s1981_s18 }
  0x11   : > { %v321_v8 = vld [vmem:[%s2086_s27] sm:$0xff]  ;;  %v322_v9 = vld [vmem:[%s2086_s27 + $0x8] sm:$0xff]  ;;  %v323_v10 = vld [vmem:[%s2086_s27 + $0x10] sm:$0xff] }
  0x12   : > { %v324_v11 = vld [vmem:[%s2086_s27 + $0x18] sm:$0xff]  ;;  %v325_v12 = vld [vmem:[%s2086_s27 + $0x20] sm:$0xff]  ;;  %v326_v13 = vld [vmem:[%s2086_s27 + $0x28] sm:$0xff]  ;;  %v449_v14 = vsub.f32 %v193_v0, %v321_v8  ;;  %v450_v15 = vsub.f32 %v194_v1, %v322_v9  ;;  %v451_v16 = vsub.f32 %v195_v2, %v323_v10 }
  0x13   : > { %v327_v17 = vld [vmem:[%s2086_s27 + $0x30] sm:$0xff]  ;;  %v328_v18 = vld [vmem:[%s2086_s27 + $0x38] sm:$0xff]  ;;  %v452_v19 = vsub.f32 %v196_v3, %v324_v11  ;;  %v453_v20 = vsub.f32 %v197_v4, %v325_v12  ;;  %v454_v21 = vsub.f32 %v198_v5, %v326_v13  ;;  %v210_v3 = vld [vmem:[%s2747_s0 + $0x88] sm:$0xff] }
  0x14   : > { %v455_v22 = vsub.f32 %v199_v6, %v327_v17  ;;  %v456_v23 = vsub.f32 %v200_v7, %v328_v18  ;;  %v577_v24 = vmul.f32 %v449_v14, %v449_v14  ;;  %v578_v25 = vmul.f32 %v450_v15, %v450_v15  ;;  %v211_v4 = vld [vmem:[%s2747_s0 + $0x90] sm:$0xff]  ;;  %v212_v5 = vld [vmem:[%s2747_s0 + $0x98] sm:$0xff]  ;;  %v213_v10 = vld [vmem:[%s2747_s0 + $0xa0] sm:$0xff] }
  0x15   : > { %v579_v26 = vmul.f32 %v451_v16, %v451_v16  ;;  %v580_v27 = vmul.f32 %v452_v19, %v452_v19  ;;  %v581_v28 = vmul.f32 %v453_v20, %v453_v20  ;;  %v582_v29 = vmul.f32 %v454_v21, %v454_v21  ;;  %v214_v11 = vld [vmem:[%s2747_s0 + $0xa8] sm:$0xff]  ;;  %v215_v12 = vld [vmem:[%s2747_s0 + $0xb0] sm:$0xff]  ;;  %v337_v13 = vld [vmem:[%s2086_s27 + $0x80] sm:$0xff] }
  0x16   : > { %v583_v30 = vmul.f32 %v455_v22, %v455_v22  ;;  %v584_v31 = vmul.f32 %v456_v23, %v456_v23  ;;  %v705_v32 = vrot.slane %v577_v24, 4  ;;  %v711_v33 = vrot.slane %v578_v25, 4  ;;  %v338_v18 = vld [vmem:[%s2086_s27 + $0x88] sm:$0xff]  ;;  %v339_v19 = vld [vmem:[%s2086_s27 + $0x90] sm:$0xff]  ;;  %v340_v20 = vld [vmem:[%s2086_s27 + $0x98] sm:$0xff] }
  0x17   : > { %v717_v34 = vrot.slane %v579_v26, 4  ;;  %v723_v35 = vrot.slane %v580_v27, 4  ;;  %v729_v36 = vrot.slane %v581_v28, 4  ;;  %v735_v37 = vrot.slane %v582_v29, 4 }
  0x18   : > { %v706_v38 = vadd.f32 %v705_v32, %v577_v24  ;;  %v712_v39 = vadd.f32 %v711_v33, %v578_v25  ;;  %v741_v40 = vrot.slane %v583_v30, 4  ;;  %v747_v41 = vrot.slane %v584_v31, 4  ;;  %v341_v25 = vld [vmem:[%s2086_s27 + $0xa0] sm:$0xff]  ;;  %v344_v32 = vld [vmem:[%s2086_s27 + $0xb8] sm:$0xff] }
  0x19   : > { %v718_v42 = vadd.f32 %v717_v34, %v579_v26  ;;  %v724_v43 = vadd.f32 %v723_v35, %v580_v27  ;;  %v730_v44 = vadd.f32 %v729_v36, %v581_v28  ;;  %v736_v45 = vadd.f32 %v735_v37, %v582_v29  ;;  %v342_v26 = vld [vmem:[%s2086_s27 + $0xa8] sm:$0xff]  ;;  %v343_v27 = vld [vmem:[%s2086_s27 + $0xb0] sm:$0xff] }
  0x1a   : > { %v707_v46 = vrot.slane %v706_v38, 2  ;;  %v713_v47 = vrot.slane %v712_v39, 2  ;;  %v742_v48 = vadd.f32 %v741_v40, %v583_v30  ;;  %v748_v49 = vadd.f32 %v747_v41, %v584_v31  ;;  %v216_v31 = vld [vmem:[%s2747_s0 + $0xb8] sm:$0xff] }
  0x1b   : > { %v719_v50 = vrot.slane %v718_v42, 2  ;;  %v725_v51 = vrot.slane %v724_v43, 2  ;;  %v731_v52 = vrot.slane %v730_v44, 2  ;;  %v737_v53 = vrot.slane %v736_v45, 2 }
  0x1c   : > { %v708_v54 = vadd.f32 %v707_v46, %v706_v38  ;;  %v714_v55 = vadd.f32 %v713_v47, %v712_v39  ;;  %v743_v56 = vrot.slane %v742_v48, 2  ;;  %v749_v57 = vrot.slane %v748_v49, 2 }
  0x1d   : > { %v720_v58 = vadd.f32 %v719_v50, %v718_v42  ;;  %v726_v59 = vadd.f32 %v725_v51, %v724_v43  ;;  %v732_v60 = vadd.f32 %v731_v52, %v730_v44  ;;  %v738_v61 = vadd.f32 %v737_v53, %v736_v45 }
  0x1e   : > { %v709_v63 = vrot.slane %v708_v54, 1  ;;  %v715_v0 = vrot.slane %v714_v55, 1  ;;  %v744_v1 = vadd.f32 %v743_v56, %v742_v48  ;;  %v750_v2 = vadd.f32 %v749_v57, %v748_v49 }
  0x1f   : > { %v721_v6 = vrot.slane %v720_v58, 1  ;;  %v727_v7 = vrot.slane %v726_v59, 1  ;;  %v733_v8 = vrot.slane %v732_v60, 1  ;;  %v739_v9 = vrot.slane %v738_v61, 1 }
  0x20   : > { %v710_v14 = vadd.f32 %v709_v63, %v708_v54  ;;  %v716_v15 = vadd.f32 %v715_v0, %v714_v55  ;;  %v745_v16 = vrot.slane %v744_v1, 1  ;;  %v751_v17 = vrot.slane %v750_v2, 1 }
  0x21   : > { %v722_v21 = vadd.f32 %v721_v6, %v720_v58  ;;  %v728_v22 = vadd.f32 %v727_v7, %v726_v59  ;;  %v734_v23 = vadd.f32 %v733_v8, %v732_v60  ;;  %v740_v24 = vadd.f32 %v739_v9, %v738_v61 }
  0x22   : > { %v746_v28 = vadd.f32 %v745_v16, %v744_v1  ;;  %v752_v29 = vadd.f32 %v751_v17, %v750_v2  ;;  %v1602_v30 = vsel %vm1601_vm0, %v716_v15, %v710_v14  ;;  %v465_v33 = vsub.f32 %v209_v62, %v337_v13 }
  0x23   : > { %v1604_v34 = vsel %vm1603_vm1, %v722_v21, %v1602_v30  ;;  %v466_v35 = vsub.f32 %v210_v3, %v338_v18  ;;  %v467_v36 = vsub.f32 %v211_v4, %v339_v19  ;;  %v468_v37 = vsub.f32 %v212_v5, %v340_v20  ;;  %v205_v30 = vld [vmem:[%s2747_s0 + $0x60] sm:$0xff] }
  0x24   : > { %v1606_v38 = vsel %vm1605_vm2, %v728_v22, %v1604_v34  ;;  %v469_v39 = vsub.f32 %v213_v10, %v341_v25  ;;  %v470_v40 = vsub.f32 %v214_v11, %v342_v26  ;;  %v471_v41 = vsub.f32 %v215_v12, %v343_v27  ;;  %v201_v22 = vld [vmem:[%s2747_s0 + $0x40] sm:$0xff] }
  0x25   : > { %v1608_v42 = vsel %vm1607_vm3, %v734_v23, %v1606_v38  ;;  %v472_v43 = vsub.f32 %v216_v31, %v344_v32  ;;  %v593_v44 = vmul.f32 %v465_v33, %v465_v33  ;;  %v594_v45 = vmul.f32 %v466_v35, %v466_v35  ;;  %v202_v23 = vld [vmem:[%s2747_s0 + $0x48] sm:$0xff]  ;;  %v329_v38 = vld [vmem:[%s2086_s27 + $0x40] sm:$0xff] }
  0x26   : > { %v1610_v46 = vsel %vm1609_vm4, %v740_v24, %v1608_v42  ;;  %v595_v47 = vmul.f32 %v467_v36, %v467_v36  ;;  %v596_v48 = vmul.f32 %v468_v37, %v468_v37  ;;  %v597_v49 = vmul.f32 %v469_v39, %v469_v39  ;;  %v206_v35 = vld [vmem:[%s2747_s0 + $0x68] sm:$0xff]  ;;  %v207_v36 = vld [vmem:[%s2747_s0 + $0x70] sm:$0xff]  ;;  %v208_v37 = vld [vmem:[%s2747_s0 + $0x78] sm:$0xff] }
  0x27   : > { %v1612_v50 = vsel %vm1611_vm5, %v746_v28, %v1610_v46  ;;  %v598_v51 = vmul.f32 %v470_v40, %v470_v40  ;;  %v599_v52 = vmul.f32 %v471_v41, %v471_v41  ;;  %v600_v53 = vmul.f32 %v472_v43, %v472_v43  ;;  %v203_v28 = vld [vmem:[%s2747_s0 + $0x50] sm:$0xff]  ;;  %v330_v39 = vld [vmem:[%s2086_s27 + $0x48] sm:$0xff]  ;;  %v333_v46 = vld [vmem:[%s2086_s27 + $0x60] sm:$0xff] }
  0x28   : > { %v1614_v54 = vsel %vm1613_vm6, %v752_v29, %v1612_v50  ;;  %v801_v55 = vrot.slane %v593_v44, 4  ;;  %v807_v56 = vrot.slane %v594_v45, 4  ;;  %v813_v57 = vrot.slane %v595_v47, 4  ;;  %v204_v29 = vld [vmem:[%s2747_s0 + $0x58] sm:$0xff] }
  0x29   : > { %1736 = vadd.xlane.f32.xlu0 %v1614_v54  ;;  %v819_v58 = vrot.slane %v596_v48, 4  ;;  %v825_v59 = vrot.slane %v597_v49, 4  ;;  %v831_v60 = vrot.slane %v598_v51, 4  ;;  %v837_v61 = vrot.slane %v599_v52, 4 }
  0x2a   : > { %v802_v62 = vadd.f32 %v801_v55, %v593_v44  ;;  %v808_v63 = vadd.f32 %v807_v56, %v594_v45  ;;  %v814_v0 = vadd.f32 %v813_v57, %v595_v47  ;;  %v843_v1 = vrot.slane %v600_v53, 4  ;;  %v331_v44 = vld [vmem:[%s2086_s27 + $0x50] sm:$0xff]  ;;  %v332_v45 = vld [vmem:[%s2086_s27 + $0x58] sm:$0xff] }
  0x2b   : > { %v820_v2 = vadd.f32 %v819_v58, %v596_v48  ;;  %v826_v3 = vadd.f32 %v825_v59, %v597_v49  ;;  %v832_v4 = vadd.f32 %v831_v60, %v598_v51  ;;  %v838_v5 = vadd.f32 %v837_v61, %v599_v52  ;;  %v334_v51 = vld [vmem:[%s2086_s27 + $0x68] sm:$0xff]  ;;  %v335_v52 = vld [vmem:[%s2086_s27 + $0x70] sm:$0xff] }
  0x2c   : > { %v803_v6 = vrot.slane %v802_v62, 2  ;;  %v809_v7 = vrot.slane %v808_v63, 2  ;;  %v815_v8 = vrot.slane %v814_v0, 2  ;;  %v844_v9 = vadd.f32 %v843_v1, %v600_v53  ;;  %v336_v53 = vld [vmem:[%s2086_s27 + $0x78] sm:$0xff] }
  0x2d   : > { %v821_v10 = vrot.slane %v820_v2, 2  ;;  %v827_v11 = vrot.slane %v826_v3, 2  ;;  %v833_v12 = vrot.slane %v832_v4, 2  ;;  %v839_v13 = vrot.slane %v838_v5, 2 }
  0x2e   : > { %v804_v14 = vadd.f32 %v803_v6, %v802_v62  ;;  %v810_v15 = vadd.f32 %v809_v7, %v808_v63  ;;  %v816_v16 = vadd.f32 %v815_v8, %v814_v0  ;;  %v845_v17 = vrot.slane %v844_v9, 2 }
  0x2f   : > { %v822_v18 = vadd.f32 %v821_v10, %v820_v2  ;;  %v828_v19 = vadd.f32 %v827_v11, %v826_v3  ;;  %v834_v20 = vadd.f32 %v833_v12, %v832_v4  ;;  %v840_v21 = vadd.f32 %v839_v13, %v838_v5 }
  0x30   : > { %v805_v24 = vrot.slane %v804_v14, 1  ;;  %v811_v25 = vrot.slane %v810_v15, 1  ;;  %v817_v26 = vrot.slane %v816_v16, 1  ;;  %v846_v27 = vadd.f32 %v845_v17, %v844_v9 }
  0x31   : > { %v823_v31 = vrot.slane %v822_v18, 1  ;;  %v829_v32 = vrot.slane %v828_v19, 1  ;;  %v835_v33 = vrot.slane %v834_v20, 1  ;;  %v841_v34 = vrot.slane %v840_v21, 1 }
  0x32   : > { %v806_v40 = vadd.f32 %v805_v24, %v804_v14  ;;  %v812_v41 = vadd.f32 %v811_v25, %v810_v15  ;;  %v818_v42 = vadd.f32 %v817_v26, %v816_v16  ;;  %v847_v43 = vrot.slane %v846_v27, 1 }
  0x33   : > { %v824_v47 = vadd.f32 %v823_v31, %v822_v18  ;;  %v830_v48 = vadd.f32 %v829_v32, %v828_v19  ;;  %v836_v49 = vadd.f32 %v835_v33, %v834_v20  ;;  %v842_v50 = vadd.f32 %v841_v34, %v840_v21 }
  0x34   : > { %v848_v54 = vadd.f32 %v847_v43, %v846_v27  ;;  %v1622_v55 = vsel %vm1601_vm0, %v812_v41, %v806_v40  ;;  %v457_v56 = vsub.f32 %v201_v22, %v329_v38  ;;  %v458_v57 = vsub.f32 %v202_v23, %v330_v39 }
  0x35   : > { %v1623_v58 = vsel %vm1603_vm1, %v818_v42, %v1622_v55  ;;  %v459_v59 = vsub.f32 %v203_v28, %v331_v44  ;;  %v460_v60 = vsub.f32 %v204_v29, %v332_v45  ;;  %v461_v61 = vsub.f32 %v205_v30, %v333_v46  ;;  %v217_v46 = vld [vmem:[%s2747_s0 + $0xc0] sm:$0xff]  ;;  %v222_v55 = vld [vmem:[%s2747_s0 + $0xe8] sm:$0xff] }
  0x36   : > { %v1624_v62 = vsel %vm1605_vm2, %v824_v47, %v1623_v58  ;;  %v462_v63 = vsub.f32 %v206_v35, %v334_v51  ;;  %v463_v0 = vsub.f32 %v207_v36, %v335_v52  ;;  %v464_v1 = vsub.f32 %v208_v37, %v336_v53  ;;  %v218_v47 = vld [vmem:[%s2747_s0 + $0xc8] sm:$0xff]  ;;  %v220_v53 = vld [vmem:[%s2747_s0 + $0xd8] sm:$0xff] }
  0x37   : > { %v1625_v2 = vsel %vm1607_vm3, %v830_v48, %v1624_v62  ;;  %v585_v3 = vmul.f32 %v457_v56, %v457_v56  ;;  %v586_v4 = vmul.f32 %v458_v57, %v458_v57  ;;  %v587_v5 = vmul.f32 %v459_v59, %v459_v59  ;;  %v219_v48 = vld [vmem:[%s2747_s0 + $0xd0] sm:$0xff]  ;;  %v345_v56 = vld [vmem:[%s2086_s27 + $0xc0] sm:$0xff]  ;;  %v346_v62 = vld [vmem:[%s2086_s27 + $0xc8] sm:$0xff] }
  0x38   : > { %v1626_v6 = vsel %vm1609_vm4, %v836_v49, %v1625_v2  ;;  %v588_v7 = vmul.f32 %v460_v60, %v460_v60  ;;  %v589_v8 = vmul.f32 %v461_v61, %v461_v61  ;;  %v590_v9 = vmul.f32 %v462_v63, %v462_v63  ;;  %v223_v61 = vld [vmem:[%s2747_s0 + $0xf0] sm:$0xff] }
  0x39   : > { %v1627_v10 = vsel %vm1611_vm5, %v842_v50, %v1626_v6  ;;  %v591_v11 = vmul.f32 %v463_v0, %v463_v0  ;;  %v592_v12 = vmul.f32 %v464_v1, %v464_v1  ;;  %v753_v13 = vrot.slane %v585_v3, 4  ;;  %v347_v63 = vld [vmem:[%s2086_s27 + $0xd0] sm:$0xff]  ;;  %v350_v6 = vld [vmem:[%s2086_s27 + $0xe8] sm:$0xff] }
  0x3a   : > { %v1628_v14 = vsel %vm1613_vm6, %v848_v54, %v1627_v10  ;;  %v759_v15 = vrot.slane %v586_v4, 4  ;;  %v765_v16 = vrot.slane %v587_v5, 4  ;;  %v771_v17 = vrot.slane %v588_v7, 4  ;;  %v221_v54 = vld [vmem:[%s2747_s0 + $0xe0] sm:$0xff]  ;;  %v224_v10 = vld [vmem:[%s2747_s0 + $0xf8] sm:$0xff] }
  0x3b   : > { %1740 = vadd.xlane.f32.xlu1 %v1628_v14  ;;  %v754_v18 = vadd.f32 %v753_v13, %v585_v3  ;;  %v777_v19 = vrot.slane %v589_v8, 4  ;;  %v783_v20 = vrot.slane %v590_v9, 4  ;;  %v789_v21 = vrot.slane %v591_v11, 4 }
  0x3c   : > { %v760_v22 = vadd.f32 %v759_v15, %v586_v4  ;;  %v766_v23 = vadd.f32 %v765_v16, %v587_v5  ;;  %v772_v24 = vadd.f32 %v771_v17, %v588_v7  ;;  %v795_v25 = vrot.slane %v592_v12, 4  ;;  %v348_v4 = vld [vmem:[%s2086_s27 + $0xd8] sm:$0xff]  ;;  %v349_v5 = vld [vmem:[%s2086_s27 + $0xe0] sm:$0xff] }
  0x3d   : > { %v755_v26 = vrot.slane %v754_v18, 2  ;;  %v778_v27 = vadd.f32 %v777_v19, %v589_v8  ;;  %v784_v28 = vadd.f32 %v783_v20, %v590_v9  ;;  %v790_v29 = vadd.f32 %v789_v21, %v591_v11  ;;  %v351_v11 = vld [vmem:[%s2086_s27 + $0xf0] sm:$0xff] }
  0x3e   : > { %v761_v30 = vrot.slane %v760_v22, 2  ;;  %v767_v31 = vrot.slane %v766_v23, 2  ;;  %v773_v32 = vrot.slane %v772_v24, 2  ;;  %v796_v33 = vadd.f32 %v795_v25, %v592_v12  ;;  %v352_v12 = vld [vmem:[%s2086_s27 + $0xf8] sm:$0xff] }
  0x3f   : > { %v756_v34 = vadd.f32 %v755_v26, %v754_v18  ;;  %v779_v35 = vrot.slane %v778_v27, 2  ;;  %v785_v36 = vrot.slane %v784_v28, 2  ;;  %v791_v37 = vrot.slane %v790_v29, 2 }
  0x40   : > { %v762_v38 = vadd.f32 %v761_v30, %v760_v22  ;;  %v768_v39 = vadd.f32 %v767_v31, %v766_v23  ;;  %v774_v40 = vadd.f32 %v773_v32, %v772_v24  ;;  %v797_v41 = vrot.slane %v796_v33, 2 }
  0x41   : > { %v757_v42 = vrot.slane %v756_v34, 1  ;;  %v780_v43 = vadd.f32 %v779_v35, %v778_v27  ;;  %v786_v44 = vadd.f32 %v785_v36, %v784_v28  ;;  %v792_v45 = vadd.f32 %v791_v37, %v790_v29 }
  0x42   : > { %v763_v49 = vrot.slane %v762_v38, 1  ;;  %v769_v50 = vrot.slane %v768_v39, 1  ;;  %v775_v51 = vrot.slane %v774_v40, 1  ;;  %v798_v52 = vadd.f32 %v797_v41, %v796_v33 }
  0x43   : > { %v758_v57 = vadd.f32 %v757_v42, %v756_v34  ;;  %v781_v58 = vrot.slane %v780_v43, 1  ;;  %v787_v59 = vrot.slane %v786_v44, 1  ;;  %v793_v60 = vrot.slane %v792_v45, 1 }
  0x44   : > { %v764_v0 = vadd.f32 %v763_v49, %v762_v38  ;;  %v770_v1 = vadd.f32 %v769_v50, %v768_v39  ;;  %v776_v2 = vadd.f32 %v775_v51, %v774_v40  ;;  %v799_v3 = vrot.slane %v798_v52, 1 }
  0x45   : > { %v782_v7 = vadd.f32 %v781_v58, %v780_v43  ;;  %v788_v8 = vadd.f32 %v787_v59, %v786_v44  ;;  %v794_v9 = vadd.f32 %v793_v60, %v792_v45  ;;  %v473_v13 = vsub.f32 %v217_v46, %v345_v56 }
  0x46   : > { %v800_v14 = vadd.f32 %v799_v3, %v798_v52  ;;  %v1615_v15 = vsel %vm1601_vm0, %v764_v0, %v758_v57  ;;  %v474_v16 = vsub.f32 %v218_v47, %v346_v62  ;;  %v475_v17 = vsub.f32 %v219_v48, %v347_v63 }
  0x47   : > { %v1616_v18 = vsel %vm1603_vm1, %v770_v1, %v1615_v15  ;;  %v476_v19 = vsub.f32 %v220_v53, %v348_v4  ;;  %v477_v20 = vsub.f32 %v221_v54, %v349_v5  ;;  %v478_v21 = vsub.f32 %v222_v55, %v350_v6  ;;  %v225_v6 = vld [vmem:[%s2747_s0 + $0x100] sm:$0xff]  ;;  %v230_v15 = vld [vmem:[%s2747_s0 + $0x128] sm:$0xff] }
  0x48   : > { %v1617_v22 = vsel %vm1605_vm2, %v776_v2, %v1616_v18  ;;  %v479_v23 = vsub.f32 %v223_v61, %v351_v11  ;;  %v480_v24 = vsub.f32 %v224_v10, %v352_v12  ;;  %v601_v25 = vmul.f32 %v473_v13, %v473_v13  ;;  %v228_v13 = vld [vmem:[%s2747_s0 + $0x118] sm:$0xff] }
  0x49   : > { %v1618_v26 = vsel %vm1607_vm3, %v782_v7, %v1617_v22  ;;  %v602_v27 = vmul.f32 %v474_v16, %v474_v16  ;;  %v603_v28 = vmul.f32 %v475_v17, %v475_v17  ;;  %v604_v29 = vmul.f32 %v476_v19, %v476_v19  ;;  %v226_v7 = vld [vmem:[%s2747_s0 + $0x108] sm:$0xff]  ;;  %v353_v16 = vld [vmem:[%s2086_s27 + $0x100] sm:$0xff] }
  0x4a   : > { %v1619_v30 = vsel %vm1609_vm4, %v788_v8, %v1618_v26  ;;  %v605_v31 = vmul.f32 %v477_v20, %v477_v20  ;;  %v606_v32 = vmul.f32 %v478_v21, %v478_v21  ;;  %v607_v33 = vmul.f32 %v479_v23, %v479_v23  ;;  %v227_v8 = vld [vmem:[%s2747_s0 + $0x110] sm:$0xff]  ;;  %v354_v22 = vld [vmem:[%s2086_s27 + $0x108] sm:$0xff] }
  0x4b   : > { %v1620_v34 = vsel %vm1611_vm5, %v794_v9, %v1619_v30  ;;  %v608_v35 = vmul.f32 %v480_v24, %v480_v24  ;;  %v849_v36 = vrot.slane %v601_v25, 4  ;;  %v855_v37 = vrot.slane %v602_v27, 4  ;;  %v231_v21 = vld [vmem:[%s2747_s0 + $0x130] sm:$0xff]  ;;  %v358_v30 = vld [vmem:[%s2086_s27 + $0x128] sm:$0xff] }
  0x4c   : > { %v1621_v38 = vsel %vm1613_vm6, %v800_v14, %v1620_v34  ;;  %v861_v39 = vrot.slane %v603_v28, 4  ;;  %v867_v40 = vrot.slane %v604_v29, 4  ;;  %v873_v41 = vrot.slane %v605_v31, 4  ;;  %v229_v14 = vld [vmem:[%s2747_s0 + $0x120] sm:$0xff]  ;;  %v355_v23 = vld [vmem:[%s2086_s27 + $0x110] sm:$0xff]  ;;  %v232_v34 = vld [vmem:[%s2747_s0 + $0x138] sm:$0xff] }
  0x4d   : > { %1738 = vadd.xlane.f32.xlu0 %v1621_v38  ;;  %v850_v42 = vadd.f32 %v849_v36, %v601_v25  ;;  %v856_v43 = vadd.f32 %v855_v37, %v602_v27  ;;  %v879_v44 = vrot.slane %v606_v32, 4  ;;  %v885_v45 = vrot.slane %v607_v33, 4  ;;  %v360_v36 = vld [vmem:[%s2086_s27 + $0x138] sm:$0xff] }
  0x4e   : > { %v862_v46 = vadd.f32 %v861_v39, %v603_v28  ;;  %v868_v47 = vadd.f32 %v867_v40, %v604_v29  ;;  %v874_v48 = vadd.f32 %v873_v41, %v605_v31  ;;  %v891_v49 = vrot.slane %v608_v35, 4  ;;  %v356_v28 = vld [vmem:[%s2086_s27 + $0x118] sm:$0xff]  ;;  %v357_v29 = vld [vmem:[%s2086_s27 + $0x120] sm:$0xff] }
  0x4f   : > { %v851_v50 = vrot.slane %v850_v42, 2  ;;  %v857_v51 = vrot.slane %v856_v43, 2  ;;  %v880_v52 = vadd.f32 %v879_v44, %v606_v32  ;;  %v886_v53 = vadd.f32 %v885_v45, %v607_v33 }
  0x50   : > { %v863_v54 = vrot.slane %v862_v46, 2  ;;  %v869_v55 = vrot.slane %v868_v47, 2  ;;  %v875_v56 = vrot.slane %v874_v48, 2  ;;  %v892_v57 = vadd.f32 %v891_v49, %v608_v35  ;;  %v359_v35 = vld [vmem:[%s2086_s27 + $0x130] sm:$0xff] }
  0x51   : > { %v852_v58 = vadd.f32 %v851_v50, %v850_v42  ;;  %v858_v59 = vadd.f32 %v857_v51, %v856_v43  ;;  %v881_v60 = vrot.slane %v880_v52, 2  ;;  %v887_v61 = vrot.slane %v886_v53, 2 }
  0x52   : > { %v864_v62 = vadd.f32 %v863_v54, %v862_v46  ;;  %v870_v63 = vadd.f32 %v869_v55, %v868_v47  ;;  %v876_v0 = vadd.f32 %v875_v56, %v874_v48  ;;  %v893_v1 = vrot.slane %v892_v57, 2 }
  0x53   : > { %v853_v2 = vrot.slane %v852_v58, 1  ;;  %v859_v3 = vrot.slane %v858_v59, 1  ;;  %v882_v4 = vadd.f32 %v881_v60, %v880_v52  ;;  %v888_v5 = vadd.f32 %v887_v61, %v886_v53 }
  0x54   : > { %v865_v9 = vrot.slane %v864_v62, 1  ;;  %v871_v10 = vrot.slane %v870_v63, 1  ;;  %v877_v11 = vrot.slane %v876_v0, 1  ;;  %v894_v12 = vadd.f32 %v893_v1, %v892_v57 }
  0x55   : > { %v854_v17 = vadd.f32 %v853_v2, %v852_v58  ;;  %v860_v18 = vadd.f32 %v859_v3, %v858_v59  ;;  %v883_v19 = vrot.slane %v882_v4, 1  ;;  %v889_v20 = vrot.slane %v888_v5, 1 }
  0x56   : > { %v866_v24 = vadd.f32 %v865_v9, %v864_v62  ;;  %v872_v25 = vadd.f32 %v871_v10, %v870_v63  ;;  %v878_v26 = vadd.f32 %v877_v11, %v876_v0  ;;  %v895_v27 = vrot.slane %v894_v12, 1 }
  0x57   : > { %v884_v31 = vadd.f32 %v883_v19, %v882_v4  ;;  %v890_v32 = vadd.f32 %v889_v20, %v888_v5  ;;  %v1629_v33 = vsel %vm1601_vm0, %v860_v18, %v854_v17  ;;  %v481_v37 = vsub.f32 %v225_v6, %v353_v16 }
  0x58   : > { %v896_v38 = vadd.f32 %v895_v27, %v894_v12  ;;  %v1630_v39 = vsel %vm1603_vm1, %v866_v24, %v1629_v33  ;;  %v482_v40 = vsub.f32 %v226_v7, %v354_v22  ;;  %v483_v41 = vsub.f32 %v227_v8, %v355_v23  ;;  %v236_v33 = vld [vmem:[%s2747_s0 + $0x158] sm:$0xff] }
  0x59   : > { %v1631_v42 = vsel %vm1605_vm2, %v872_v25, %v1630_v39  ;;  %v484_v43 = vsub.f32 %v228_v13, %v356_v28  ;;  %v485_v44 = vsub.f32 %v229_v14, %v357_v29  ;;  %v486_v45 = vsub.f32 %v230_v15, %v358_v30  ;;  %v238_v39 = vld [vmem:[%s2747_s0 + $0x168] sm:$0xff] }
  0x5a   : > { %v1632_v46 = vsel %vm1607_vm3, %v878_v26, %v1631_v42  ;;  %v487_v47 = vsub.f32 %v231_v21, %v359_v35  ;;  %v488_v48 = vsub.f32 %v232_v34, %v360_v36  ;;  %v609_v49 = vmul.f32 %v481_v37, %v481_v37  ;;  %v233_v26 = vld [vmem:[%s2747_s0 + $0x140] sm:$0xff] }
  0x5b   : > { %v1633_v50 = vsel %vm1609_vm4, %v884_v31, %v1632_v46  ;;  %v610_v51 = vmul.f32 %v482_v40, %v482_v40  ;;  %v611_v52 = vmul.f32 %v483_v41, %v483_v41  ;;  %v612_v53 = vmul.f32 %v484_v43, %v484_v43  ;;  %v234_v31 = vld [vmem:[%s2747_s0 + $0x148] sm:$0xff]  ;;  %v239_v40 = vld [vmem:[%s2747_s0 + $0x170] sm:$0xff]  ;;  %v361_v41 = vld [vmem:[%s2086_s27 + $0x140] sm:$0xff] }
  0x5c   : > { %v1634_v54 = vsel %vm1611_vm5, %v890_v32, %v1633_v50  ;;  %v613_v55 = vmul.f32 %v485_v44, %v485_v44  ;;  %v614_v56 = vmul.f32 %v486_v45, %v486_v45  ;;  %v615_v57 = vmul.f32 %v487_v47, %v487_v47  ;;  %v235_v32 = vld [vmem:[%s2747_s0 + $0x150] sm:$0xff]  ;;  %v362_v46 = vld [vmem:[%s2086_s27 + $0x148] sm:$0xff] }
  0x5d   : > { %v1635_v58 = vsel %vm1613_vm6, %v896_v38, %v1634_v54  ;;  %v616_v59 = vmul.f32 %v488_v48, %v488_v48  ;;  %v897_v60 = vrot.slane %v609_v49, 4  ;;  %v903_v61 = vrot.slane %v610_v51, 4  ;;  %v237_v38 = vld [vmem:[%s2747_s0 + $0x160] sm:$0xff]  ;;  %v363_v47 = vld [vmem:[%s2086_s27 + $0x150] sm:$0xff]  ;;  %v364_v48 = vld [vmem:[%s2086_s27 + $0x158] sm:$0xff] }
  0x5e   : > { %1742 = vadd.xlane.f32.xlu1 %v1635_v58  ;;  %v909_v62 = vrot.slane %v611_v52, 4  ;;  %v915_v63 = vrot.slane %v612_v53, 4  ;;  %v921_v0 = vrot.slane %v613_v55, 4  ;;  %v927_v1 = vrot.slane %v614_v56, 4  ;;  %v366_v54 = vld [vmem:[%s2086_s27 + $0x168] sm:$0xff] }
  0x5f   : > { %v898_v2 = vadd.f32 %v897_v60, %v609_v49  ;;  %v904_v3 = vadd.f32 %v903_v61, %v610_v51  ;;  %v933_v4 = vrot.slane %v615_v57, 4  ;;  %v939_v5 = vrot.slane %v616_v59, 4  ;;  %v368_v60 = vld [vmem:[%s2086_s27 + $0x178] sm:$0xff] }
  0x60   : > { %v910_v6 = vadd.f32 %v909_v62, %v611_v52  ;;  %v916_v7 = vadd.f32 %v915_v63, %v612_v53  ;;  %v922_v8 = vadd.f32 %v921_v0, %v613_v55  ;;  %v928_v9 = vadd.f32 %v927_v1, %v614_v56  ;;  %v365_v53 = vld [vmem:[%s2086_s27 + $0x160] sm:$0xff]  ;;  %v367_v55 = vld [vmem:[%s2086_s27 + $0x170] sm:$0xff] }
  0x61   : > { %v899_v10 = vrot.slane %v898_v2, 2  ;;  %v905_v11 = vrot.slane %v904_v3, 2  ;;  %v934_v12 = vadd.f32 %v933_v4, %v615_v57  ;;  %v940_v13 = vadd.f32 %v939_v5, %v616_v59  ;;  %v240_v59 = vld [vmem:[%s2747_s0 + $0x178] sm:$0xff] }
  0x62   : > { %v911_v14 = vrot.slane %v910_v6, 2  ;;  %v917_v15 = vrot.slane %v916_v7, 2  ;;  %v923_v16 = vrot.slane %v922_v8, 2  ;;  %v929_v17 = vrot.slane %v928_v9, 2 }
  0x63   : > { %v900_v18 = vadd.f32 %v899_v10, %v898_v2  ;;  %v906_v19 = vadd.f32 %v905_v11, %v904_v3  ;;  %v935_v20 = vrot.slane %v934_v12, 2  ;;  %v941_v21 = vrot.slane %v940_v13, 2 }
  0x64   : > { %v912_v22 = vadd.f32 %v911_v14, %v910_v6  ;;  %v918_v23 = vadd.f32 %v917_v15, %v916_v7  ;;  %v924_v24 = vadd.f32 %v923_v16, %v922_v8  ;;  %v930_v25 = vadd.f32 %v929_v17, %v928_v9 }
  0x65   : > { %v901_v27 = vrot.slane %v900_v18, 1  ;;  %v907_v28 = vrot.slane %v906_v19, 1  ;;  %v936_v29 = vadd.f32 %v935_v20, %v934_v12  ;;  %v942_v30 = vadd.f32 %v941_v21, %v940_v13 }
  0x66   : > { %v913_v34 = vrot.slane %v912_v22, 1  ;;  %v919_v35 = vrot.slane %v918_v23, 1  ;;  %v925_v36 = vrot.slane %v924_v24, 1  ;;  %v931_v37 = vrot.slane %v930_v25, 1 }
  0x67   : > { %v902_v42 = vadd.f32 %v901_v27, %v900_v18  ;;  %v908_v43 = vadd.f32 %v907_v28, %v906_v19  ;;  %v937_v44 = vrot.slane %v936_v29, 1  ;;  %v943_v45 = vrot.slane %v942_v30, 1 }
  0x68   : > { %v914_v49 = vadd.f32 %v913_v34, %v912_v22  ;;  %v920_v50 = vadd.f32 %v919_v35, %v918_v23  ;;  %v926_v51 = vadd.f32 %v925_v36, %v924_v24  ;;  %v932_v52 = vadd.f32 %v931_v37, %v930_v25 }
  0x69   : > { %v938_v56 = vadd.f32 %v937_v44, %v936_v29  ;;  %v944_v57 = vadd.f32 %v943_v45, %v942_v30  ;;  %v1636_v58 = vsel %vm1601_vm0, %v908_v43, %v902_v42  ;;  %v489_v61 = vsub.f32 %v233_v26, %v361_v41 }
  0x6a   : > { %v1637_v62 = vsel %vm1603_vm1, %v914_v49, %v1636_v58  ;;  %v490_v63 = vsub.f32 %v234_v31, %v362_v46  ;;  %v491_v0 = vsub.f32 %v235_v32, %v363_v47  ;;  %v492_v1 = vsub.f32 %v236_v33, %v364_v48  ;;  %v245_v58 = vld [vmem:[%s2747_s0 + $0x1a0] sm:$0xff] }
  0x6b   : > { %v1638_v2 = vsel %vm1605_vm2, %v920_v50, %v1637_v62  ;;  %v493_v3 = vsub.f32 %v237_v38, %v365_v53  ;;  %v494_v4 = vsub.f32 %v238_v39, %v366_v54  ;;  %v495_v5 = vsub.f32 %v239_v40, %v367_v55  ;;  %v241_v50 = vld [vmem:[%s2747_s0 + $0x180] sm:$0xff] }
  0x6c   : > { %v1639_v6 = vsel %vm1607_vm3, %v926_v51, %v1638_v2  ;;  %v496_v7 = vsub.f32 %v240_v59, %v368_v60  ;;  %v617_v8 = vmul.f32 %v489_v61, %v489_v61  ;;  %v618_v9 = vmul.f32 %v490_v63, %v490_v63  ;;  %v242_v51 = vld [vmem:[%s2747_s0 + $0x188] sm:$0xff]  ;;  %v369_v2 = vld [vmem:[%s2086_s27 + $0x180] sm:$0xff] }
  0x6d   : > { %v1640_v10 = vsel %vm1609_vm4, %v932_v52, %v1639_v6  ;;  %v619_v11 = vmul.f32 %v491_v0, %v491_v0  ;;  %v620_v12 = vmul.f32 %v492_v1, %v492_v1  ;;  %v621_v13 = vmul.f32 %v493_v3, %v493_v3  ;;  %v246_v63 = vld [vmem:[%s2747_s0 + $0x1a8] sm:$0xff]  ;;  %v247_v0 = vld [vmem:[%s2747_s0 + $0x1b0] sm:$0xff]  ;;  %v248_v1 = vld [vmem:[%s2747_s0 + $0x1b8] sm:$0xff] }
  0x6e   : > { %v1641_v14 = vsel %vm1611_vm5, %v938_v56, %v1640_v10  ;;  %v622_v15 = vmul.f32 %v494_v4, %v494_v4  ;;  %v623_v16 = vmul.f32 %v495_v5, %v495_v5  ;;  %v624_v17 = vmul.f32 %v496_v7, %v496_v7  ;;  %v243_v56 = vld [vmem:[%s2747_s0 + $0x190] sm:$0xff]  ;;  %v370_v3 = vld [vmem:[%s2086_s27 + $0x188] sm:$0xff]  ;;  %v373_v10 = vld [vmem:[%s2086_s27 + $0x1a0] sm:$0xff] }
  0x6f   : > { %v1642_v18 = vsel %vm1613_vm6, %v944_v57, %v1641_v14  ;;  %v945_v19 = vrot.slane %v617_v8, 4  ;;  %v951_v20 = vrot.slane %v618_v9, 4  ;;  %v957_v21 = vrot.slane %v619_v11, 4  ;;  %v244_v57 = vld [vmem:[%s2747_s0 + $0x198] sm:$0xff] }
  0x70   : > { %1744 = vadd.xlane.f32.xlu0 %v1642_v18  ;;  %v963_v22 = vrot.slane %v620_v12, 4  ;;  %v969_v23 = vrot.slane %v621_v13, 4  ;;  %v975_v24 = vrot.slane %v622_v15, 4  ;;  %v981_v25 = vrot.slane %v623_v16, 4 }
  0x71   : > { %v946_v26 = vadd.f32 %v945_v19, %v617_v8  ;;  %v952_v27 = vadd.f32 %v951_v20, %v618_v9  ;;  %v958_v28 = vadd.f32 %v957_v21, %v619_v11  ;;  %v987_v29 = vrot.slane %v624_v17, 4  ;;  %v371_v8 = vld [vmem:[%s2086_s27 + $0x190] sm:$0xff]  ;;  %v372_v9 = vld [vmem:[%s2086_s27 + $0x198] sm:$0xff] }
  0x72   : > { %v964_v30 = vadd.f32 %v963_v22, %v620_v12  ;;  %v970_v31 = vadd.f32 %v969_v23, %v621_v13  ;;  %v976_v32 = vadd.f32 %v975_v24, %v622_v15  ;;  %v982_v33 = vadd.f32 %v981_v25, %v623_v16  ;;  %v374_v15 = vld [vmem:[%s2086_s27 + $0x1a8] sm:$0xff]  ;;  %v375_v16 = vld [vmem:[%s2086_s27 + $0x1b0] sm:$0xff] }
  0x73   : > { %v947_v34 = vrot.slane %v946_v26, 2  ;;  %v953_v35 = vrot.slane %v952_v27, 2  ;;  %v959_v36 = vrot.slane %v958_v28, 2  ;;  %v988_v37 = vadd.f32 %v987_v29, %v624_v17  ;;  %v376_v17 = vld [vmem:[%s2086_s27 + $0x1b8] sm:$0xff] }
  0x74   : > { %v965_v38 = vrot.slane %v964_v30, 2  ;;  %v971_v39 = vrot.slane %v970_v31, 2  ;;  %v977_v40 = vrot.slane %v976_v32, 2  ;;  %v983_v41 = vrot.slane %v982_v33, 2 }
  0x75   : > { %v948_v42 = vadd.f32 %v947_v34, %v946_v26  ;;  %v954_v43 = vadd.f32 %v953_v35, %v952_v27  ;;  %v960_v44 = vadd.f32 %v959_v36, %v958_v28  ;;  %v989_v45 = vrot.slane %v988_v37, 2 }
  0x76   : > { %v966_v46 = vadd.f32 %v965_v38, %v964_v30  ;;  %v972_v47 = vadd.f32 %v971_v39, %v970_v31  ;;  %v978_v48 = vadd.f32 %v977_v40, %v976_v32  ;;  %v984_v49 = vadd.f32 %v983_v41, %v982_v33 }
  0x77   : > { %v949_v52 = vrot.slane %v948_v42, 1  ;;  %v955_v53 = vrot.slane %v954_v43, 1  ;;  %v961_v54 = vrot.slane %v960_v44, 1  ;;  %v990_v55 = vadd.f32 %v989_v45, %v988_v37 }
  0x78   : > { %v967_v59 = vrot.slane %v966_v46, 1  ;;  %v973_v60 = vrot.slane %v972_v47, 1  ;;  %v979_v61 = vrot.slane %v978_v48, 1  ;;  %v985_v62 = vrot.slane %v984_v49, 1 }
  0x79   : > { %v950_v4 = vadd.f32 %v949_v52, %v948_v42  ;;  %v956_v5 = vadd.f32 %v955_v53, %v954_v43  ;;  %v962_v6 = vadd.f32 %v961_v54, %v960_v44  ;;  %v991_v7 = vrot.slane %v990_v55, 1 }
  0x7a   : > { %v968_v11 = vadd.f32 %v967_v59, %v966_v46  ;;  %v974_v12 = vadd.f32 %v973_v60, %v972_v47  ;;  %v980_v13 = vadd.f32 %v979_v61, %v978_v48  ;;  %v986_v14 = vadd.f32 %v985_v62, %v984_v49 }
  0x7b   : > { %v992_v18 = vadd.f32 %v991_v7, %v990_v55  ;;  %v1643_v19 = vsel %vm1601_vm0, %v956_v5, %v950_v4  ;;  %v497_v20 = vsub.f32 %v241_v50, %v369_v2  ;;  %v498_v21 = vsub.f32 %v242_v51, %v370_v3 }
  0x7c   : > { %v1644_v22 = vsel %vm1603_vm1, %v962_v6, %v1643_v19  ;;  %v499_v23 = vsub.f32 %v243_v56, %v371_v8  ;;  %v500_v24 = vsub.f32 %v244_v57, %v372_v9  ;;  %v501_v25 = vsub.f32 %v245_v58, %v373_v10  ;;  %v249_v10 = vld [vmem:[%s2747_s0 + $0x1c0] sm:$0xff]  ;;  %v254_v19 = vld [vmem:[%s2747_s0 + $0x1e8] sm:$0xff] }
  0x7d   : > { %v1645_v26 = vsel %vm1605_vm2, %v968_v11, %v1644_v22  ;;  %v502_v27 = vsub.f32 %v246_v63, %v374_v15  ;;  %v503_v28 = vsub.f32 %v247_v0, %v375_v16  ;;  %v504_v29 = vsub.f32 %v248_v1, %v376_v17  ;;  %v250_v11 = vld [vmem:[%s2747_s0 + $0x1c8] sm:$0xff]  ;;  %v252_v17 = vld [vmem:[%s2747_s0 + $0x1d8] sm:$0xff] }
  0x7e   : > { %v1646_v30 = vsel %vm1607_vm3, %v974_v12, %v1645_v26  ;;  %v625_v31 = vmul.f32 %v497_v20, %v497_v20  ;;  %v626_v32 = vmul.f32 %v498_v21, %v498_v21  ;;  %v627_v33 = vmul.f32 %v499_v23, %v499_v23  ;;  %v251_v12 = vld [vmem:[%s2747_s0 + $0x1d0] sm:$0xff]  ;;  %v377_v20 = vld [vmem:[%s2086_s27 + $0x1c0] sm:$0xff]  ;;  %v378_v26 = vld [vmem:[%s2086_s27 + $0x1c8] sm:$0xff] }
  0x7f   : > { %v1647_v34 = vsel %vm1609_vm4, %v980_v13, %v1646_v30  ;;  %v628_v35 = vmul.f32 %v500_v24, %v500_v24  ;;  %v629_v36 = vmul.f32 %v501_v25, %v501_v25  ;;  %v630_v37 = vmul.f32 %v502_v27, %v502_v27  ;;  %v255_v25 = vld [vmem:[%s2747_s0 + $0x1f0] sm:$0xff] }
  0x80   : > { %v1648_v38 = vsel %vm1611_vm5, %v986_v14, %v1647_v34  ;;  %v631_v39 = vmul.f32 %v503_v28, %v503_v28  ;;  %v632_v40 = vmul.f32 %v504_v29, %v504_v29  ;;  %v993_v41 = vrot.slane %v625_v31, 4  ;;  %v379_v27 = vld [vmem:[%s2086_s27 + $0x1d0] sm:$0xff]  ;;  %v382_v34 = vld [vmem:[%s2086_s27 + $0x1e8] sm:$0xff] }
  0x81   : > { %v1649_v42 = vsel %vm1613_vm6, %v992_v18, %v1648_v38  ;;  %v999_v43 = vrot.slane %v626_v32, 4  ;;  %v1005_v44 = vrot.slane %v627_v33, 4  ;;  %v1011_v45 = vrot.slane %v628_v35, 4  ;;  %v253_v18 = vld [vmem:[%s2747_s0 + $0x1e0] sm:$0xff]  ;;  %v256_v38 = vld [vmem:[%s2747_s0 + $0x1f8] sm:$0xff] }
  0x82   : > { %1746 = vadd.xlane.f32.xlu1 %v1649_v42  ;;  %v994_v46 = vadd.f32 %v993_v41, %v625_v31  ;;  %v1017_v47 = vrot.slane %v629_v36, 4  ;;  %v1023_v48 = vrot.slane %v630_v37, 4  ;;  %v1029_v49 = vrot.slane %v631_v39, 4 }
  0x83   : > { %v1000_v50 = vadd.f32 %v999_v43, %v626_v32  ;;  %v1006_v51 = vadd.f32 %v1005_v44, %v627_v33  ;;  %v1012_v52 = vadd.f32 %v1011_v45, %v628_v35  ;;  %v1035_v53 = vrot.slane %v632_v40, 4  ;;  %v380_v32 = vld [vmem:[%s2086_s27 + $0x1d8] sm:$0xff]  ;;  %v381_v33 = vld [vmem:[%s2086_s27 + $0x1e0] sm:$0xff] }
  0x84   : > { %v995_v54 = vrot.slane %v994_v46, 2  ;;  %v1018_v55 = vadd.f32 %v1017_v47, %v629_v36  ;;  %v1024_v56 = vadd.f32 %v1023_v48, %v630_v37  ;;  %v1030_v57 = vadd.f32 %v1029_v49, %v631_v39  ;;  %v383_v39 = vld [vmem:[%s2086_s27 + $0x1f0] sm:$0xff] }
  0x85   : > { %v1001_v58 = vrot.slane %v1000_v50, 2  ;;  %v1007_v59 = vrot.slane %v1006_v51, 2  ;;  %v1013_v60 = vrot.slane %v1012_v52, 2  ;;  %v1036_v61 = vadd.f32 %v1035_v53, %v632_v40  ;;  %v384_v40 = vld [vmem:[%s2086_s27 + $0x1f8] sm:$0xff] }
  0x86   : > { %v996_v62 = vadd.f32 %v995_v54, %v994_v46  ;;  %v1019_v63 = vrot.slane %v1018_v55, 2  ;;  %v1025_v0 = vrot.slane %v1024_v56, 2  ;;  %v1031_v1 = vrot.slane %v1030_v57, 2 }
  0x87   : > { %v1002_v2 = vadd.f32 %v1001_v58, %v1000_v50  ;;  %v1008_v3 = vadd.f32 %v1007_v59, %v1006_v51  ;;  %v1014_v4 = vadd.f32 %v1013_v60, %v1012_v52  ;;  %v1037_v5 = vrot.slane %v1036_v61, 2 }
  0x88   : > { %v997_v6 = vrot.slane %v996_v62, 1  ;;  %v1020_v7 = vadd.f32 %v1019_v63, %v1018_v55  ;;  %v1026_v8 = vadd.f32 %v1025_v0, %v1024_v56  ;;  %v1032_v9 = vadd.f32 %v1031_v1, %v1030_v57 }
  0x89   : > { %v1003_v13 = vrot.slane %v1002_v2, 1  ;;  %v1009_v14 = vrot.slane %v1008_v3, 1  ;;  %v1015_v15 = vrot.slane %v1014_v4, 1  ;;  %v1038_v16 = vadd.f32 %v1037_v5, %v1036_v61 }
  0x8a   : > { %v998_v21 = vadd.f32 %v997_v6, %v996_v62  ;;  %v1021_v22 = vrot.slane %v1020_v7, 1  ;;  %v1027_v23 = vrot.slane %v1026_v8, 1  ;;  %v1033_v24 = vrot.slane %v1032_v9, 1 }
  0x8b   : > { %v1004_v28 = vadd.f32 %v1003_v13, %v1002_v2  ;;  %v1010_v29 = vadd.f32 %v1009_v14, %v1008_v3  ;;  %v1016_v30 = vadd.f32 %v1015_v15, %v1014_v4  ;;  %v1039_v31 = vrot.slane %v1038_v16, 1 }
  0x8c   : > { %v1022_v35 = vadd.f32 %v1021_v22, %v1020_v7  ;;  %v1028_v36 = vadd.f32 %v1027_v23, %v1026_v8  ;;  %v1034_v37 = vadd.f32 %v1033_v24, %v1032_v9  ;;  %v505_v41 = vsub.f32 %v249_v10, %v377_v20 }
  0x8d   : > { %v1040_v42 = vadd.f32 %v1039_v31, %v1038_v16  ;;  %v1650_v43 = vsel %vm1601_vm0, %v1004_v28, %v998_v21  ;;  %v506_v44 = vsub.f32 %v250_v11, %v378_v26  ;;  %v507_v45 = vsub.f32 %v251_v12, %v379_v27 }
  0x8e   : > { %v1651_v46 = vsel %vm1603_vm1, %v1010_v29, %v1650_v43  ;;  %v508_v47 = vsub.f32 %v252_v17, %v380_v32  ;;  %v509_v48 = vsub.f32 %v253_v18, %v381_v33  ;;  %v510_v49 = vsub.f32 %v254_v19, %v382_v34  ;;  %v257_v34 = vld [vmem:[%s2747_s0 + $0x200] sm:$0xff]  ;;  %v262_v43 = vld [vmem:[%s2747_s0 + $0x228] sm:$0xff] }
  0x8f   : > { %v1652_v50 = vsel %vm1605_vm2, %v1016_v30, %v1651_v46  ;;  %v511_v51 = vsub.f32 %v255_v25, %v383_v39  ;;  %v512_v52 = vsub.f32 %v256_v38, %v384_v40  ;;  %v633_v53 = vmul.f32 %v505_v41, %v505_v41  ;;  %v260_v41 = vld [vmem:[%s2747_s0 + $0x218] sm:$0xff] }
  0x90   : > { %v1653_v54 = vsel %vm1607_vm3, %v1022_v35, %v1652_v50  ;;  %v634_v55 = vmul.f32 %v506_v44, %v506_v44  ;;  %v635_v56 = vmul.f32 %v507_v45, %v507_v45  ;;  %v636_v57 = vmul.f32 %v508_v47, %v508_v47  ;;  %v258_v35 = vld [vmem:[%s2747_s0 + $0x208] sm:$0xff]  ;;  %v385_v44 = vld [vmem:[%s2086_s27 + $0x200] sm:$0xff] }
  0x91   : > { %v1654_v58 = vsel %vm1609_vm4, %v1028_v36, %v1653_v54  ;;  %v637_v59 = vmul.f32 %v509_v48, %v509_v48  ;;  %v638_v60 = vmul.f32 %v510_v49, %v510_v49  ;;  %v639_v61 = vmul.f32 %v511_v51, %v511_v51  ;;  %v259_v36 = vld [vmem:[%s2747_s0 + $0x210] sm:$0xff]  ;;  %v386_v50 = vld [vmem:[%s2086_s27 + $0x208] sm:$0xff] }
  0x92   : > { %v1655_v62 = vsel %vm1611_vm5, %v1034_v37, %v1654_v58  ;;  %v640_v63 = vmul.f32 %v512_v52, %v512_v52  ;;  %v1041_v0 = vrot.slane %v633_v53, 4  ;;  %v1047_v1 = vrot.slane %v634_v55, 4  ;;  %v263_v49 = vld [vmem:[%s2747_s0 + $0x230] sm:$0xff]  ;;  %v390_v58 = vld [vmem:[%s2086_s27 + $0x228] sm:$0xff] }
  0x93   : > { %v1656_v2 = vsel %vm1613_vm6, %v1040_v42, %v1655_v62  ;;  %v1053_v3 = vrot.slane %v635_v56, 4  ;;  %v1059_v4 = vrot.slane %v636_v57, 4  ;;  %v1065_v5 = vrot.slane %v637_v59, 4  ;;  %v261_v42 = vld [vmem:[%s2747_s0 + $0x220] sm:$0xff]  ;;  %v387_v51 = vld [vmem:[%s2086_s27 + $0x210] sm:$0xff]  ;;  %v264_v62 = vld [vmem:[%s2747_s0 + $0x238] sm:$0xff] }
  0x94   : > { %1748 = vadd.xlane.f32.xlu0 %v1656_v2  ;;  %v1042_v6 = vadd.f32 %v1041_v0, %v633_v53  ;;  %v1048_v7 = vadd.f32 %v1047_v1, %v634_v55  ;;  %v1071_v8 = vrot.slane %v638_v60, 4  ;;  %v1077_v9 = vrot.slane %v639_v61, 4  ;;  %v392_v0 = vld [vmem:[%s2086_s27 + $0x238] sm:$0xff] }
  0x95   : > { %v1054_v10 = vadd.f32 %v1053_v3, %v635_v56  ;;  %v1060_v11 = vadd.f32 %v1059_v4, %v636_v57  ;;  %v1066_v12 = vadd.f32 %v1065_v5, %v637_v59  ;;  %v1083_v13 = vrot.slane %v640_v63, 4  ;;  %v388_v56 = vld [vmem:[%s2086_s27 + $0x218] sm:$0xff]  ;;  %v389_v57 = vld [vmem:[%s2086_s27 + $0x220] sm:$0xff] }
  0x96   : > { %v1043_v14 = vrot.slane %v1042_v6, 2  ;;  %v1049_v15 = vrot.slane %v1048_v7, 2  ;;  %v1072_v16 = vadd.f32 %v1071_v8, %v638_v60  ;;  %v1078_v17 = vadd.f32 %v1077_v9, %v639_v61 }
  0x97   : > { %v1055_v18 = vrot.slane %v1054_v10, 2  ;;  %v1061_v19 = vrot.slane %v1060_v11, 2  ;;  %v1067_v20 = vrot.slane %v1066_v12, 2  ;;  %v1084_v21 = vadd.f32 %v1083_v13, %v640_v63  ;;  %v391_v63 = vld [vmem:[%s2086_s27 + $0x230] sm:$0xff] }
  0x98   : > { %v1044_v22 = vadd.f32 %v1043_v14, %v1042_v6  ;;  %v1050_v23 = vadd.f32 %v1049_v15, %v1048_v7  ;;  %v1073_v24 = vrot.slane %v1072_v16, 2  ;;  %v1079_v25 = vrot.slane %v1078_v17, 2 }
  0x99   : > { %v1056_v26 = vadd.f32 %v1055_v18, %v1054_v10  ;;  %v1062_v27 = vadd.f32 %v1061_v19, %v1060_v11  ;;  %v1068_v28 = vadd.f32 %v1067_v20, %v1066_v12  ;;  %v1085_v29 = vrot.slane %v1084_v21, 2 }
  0x9a   : > { %v1045_v30 = vrot.slane %v1044_v22, 1  ;;  %v1051_v31 = vrot.slane %v1050_v23, 1  ;;  %v1074_v32 = vadd.f32 %v1073_v24, %v1072_v16  ;;  %v1080_v33 = vadd.f32 %v1079_v25, %v1078_v17 }
  0x9b   : > { %v1057_v37 = vrot.slane %v1056_v26, 1  ;;  %v1063_v38 = vrot.slane %v1062_v27, 1  ;;  %v1069_v39 = vrot.slane %v1068_v28, 1  ;;  %v1086_v40 = vadd.f32 %v1085_v29, %v1084_v21 }
  0x9c   : > { %v1046_v45 = vadd.f32 %v1045_v30, %v1044_v22  ;;  %v1052_v46 = vadd.f32 %v1051_v31, %v1050_v23  ;;  %v1075_v47 = vrot.slane %v1074_v32, 1  ;;  %v1081_v48 = vrot.slane %v1080_v33, 1 }
  0x9d   : > { %v1058_v52 = vadd.f32 %v1057_v37, %v1056_v26  ;;  %v1064_v53 = vadd.f32 %v1063_v38, %v1062_v27  ;;  %v1070_v54 = vadd.f32 %v1069_v39, %v1068_v28  ;;  %v1087_v55 = vrot.slane %v1086_v40, 1 }
  0x9e   : > { %v1076_v59 = vadd.f32 %v1075_v47, %v1074_v32  ;;  %v1082_v60 = vadd.f32 %v1081_v48, %v1080_v33  ;;  %v1657_v61 = vsel %vm1601_vm0, %v1052_v46, %v1046_v45  ;;  %v513_v1 = vsub.f32 %v257_v34, %v385_v44 }
  0x9f   : > { %v1088_v2 = vadd.f32 %v1087_v55, %v1086_v40  ;;  %v1658_v3 = vsel %vm1603_vm1, %v1058_v52, %v1657_v61  ;;  %v514_v4 = vsub.f32 %v258_v35, %v386_v50  ;;  %v515_v5 = vsub.f32 %v259_v36, %v387_v51  ;;  %v268_v61 = vld [vmem:[%s2747_s0 + $0x258] sm:$0xff] }
  0xa0   : > { %v1659_v6 = vsel %vm1605_vm2, %v1064_v53, %v1658_v3  ;;  %v516_v7 = vsub.f32 %v260_v41, %v388_v56  ;;  %v517_v8 = vsub.f32 %v261_v42, %v389_v57  ;;  %v518_v9 = vsub.f32 %v262_v43, %v390_v58  ;;  %v270_v3 = vld [vmem:[%s2747_s0 + $0x268] sm:$0xff] }
  0xa1   : > { %v1660_v10 = vsel %vm1607_vm3, %v1070_v54, %v1659_v6  ;;  %v519_v11 = vsub.f32 %v263_v49, %v391_v63  ;;  %v520_v12 = vsub.f32 %v264_v62, %v392_v0  ;;  %v641_v13 = vmul.f32 %v513_v1, %v513_v1  ;;  %v265_v54 = vld [vmem:[%s2747_s0 + $0x240] sm:$0xff] }
  0xa2   : > { %v1661_v14 = vsel %vm1609_vm4, %v1076_v59, %v1660_v10  ;;  %v642_v15 = vmul.f32 %v514_v4, %v514_v4  ;;  %v643_v16 = vmul.f32 %v515_v5, %v515_v5  ;;  %v644_v17 = vmul.f32 %v516_v7, %v516_v7  ;;  %v266_v59 = vld [vmem:[%s2747_s0 + $0x248] sm:$0xff]  ;;  %v271_v4 = vld [vmem:[%s2747_s0 + $0x270] sm:$0xff]  ;;  %v393_v5 = vld [vmem:[%s2086_s27 + $0x240] sm:$0xff] }
  0xa3   : > { %v1662_v18 = vsel %vm1611_vm5, %v1082_v60, %v1661_v14  ;;  %v645_v19 = vmul.f32 %v517_v8, %v517_v8  ;;  %v646_v20 = vmul.f32 %v518_v9, %v518_v9  ;;  %v647_v21 = vmul.f32 %v519_v11, %v519_v11  ;;  %v267_v60 = vld [vmem:[%s2747_s0 + $0x250] sm:$0xff]  ;;  %v394_v10 = vld [vmem:[%s2086_s27 + $0x248] sm:$0xff] }
  0xa4   : > { %v1663_v22 = vsel %vm1613_vm6, %v1088_v2, %v1662_v18  ;;  %v648_v23 = vmul.f32 %v520_v12, %v520_v12  ;;  %v1089_v24 = vrot.slane %v641_v13, 4  ;;  %v1095_v25 = vrot.slane %v642_v15, 4  ;;  %v269_v2 = vld [vmem:[%s2747_s0 + $0x260] sm:$0xff]  ;;  %v395_v11 = vld [vmem:[%s2086_s27 + $0x250] sm:$0xff]  ;;  %v396_v12 = vld [vmem:[%s2086_s27 + $0x258] sm:$0xff] }
  0xa5   : > { %1750 = vadd.xlane.f32.xlu1 %v1663_v22  ;;  %v1101_v26 = vrot.slane %v643_v16, 4  ;;  %v1107_v27 = vrot.slane %v644_v17, 4  ;;  %v1113_v28 = vrot.slane %v645_v19, 4  ;;  %v1119_v29 = vrot.slane %v646_v20, 4  ;;  %v398_v18 = vld [vmem:[%s2086_s27 + $0x268] sm:$0xff] }
  0xa6   : > { %v1090_v30 = vadd.f32 %v1089_v24, %v641_v13  ;;  %v1096_v31 = vadd.f32 %v1095_v25, %v642_v15  ;;  %v1125_v32 = vrot.slane %v647_v21, 4  ;;  %v1131_v33 = vrot.slane %v648_v23, 4  ;;  %v400_v24 = vld [vmem:[%s2086_s27 + $0x278] sm:$0xff] }
  0xa7   : > { %v1102_v34 = vadd.f32 %v1101_v26, %v643_v16  ;;  %v1108_v35 = vadd.f32 %v1107_v27, %v644_v17  ;;  %v1114_v36 = vadd.f32 %v1113_v28, %v645_v19  ;;  %v1120_v37 = vadd.f32 %v1119_v29, %v646_v20  ;;  %v397_v17 = vld [vmem:[%s2086_s27 + $0x260] sm:$0xff]  ;;  %v399_v19 = vld [vmem:[%s2086_s27 + $0x270] sm:$0xff] }
  0xa8   : > { %v1091_v38 = vrot.slane %v1090_v30, 2  ;;  %v1097_v39 = vrot.slane %v1096_v31, 2  ;;  %v1126_v40 = vadd.f32 %v1125_v32, %v647_v21  ;;  %v1132_v41 = vadd.f32 %v1131_v33, %v648_v23  ;;  %v272_v23 = vld [vmem:[%s2747_s0 + $0x278] sm:$0xff] }
  0xa9   : > { %v1103_v42 = vrot.slane %v1102_v34, 2  ;;  %v1109_v43 = vrot.slane %v1108_v35, 2  ;;  %v1115_v44 = vrot.slane %v1114_v36, 2  ;;  %v1121_v45 = vrot.slane %v1120_v37, 2 }
  0xaa   : > { %v1092_v46 = vadd.f32 %v1091_v38, %v1090_v30  ;;  %v1098_v47 = vadd.f32 %v1097_v39, %v1096_v31  ;;  %v1127_v48 = vrot.slane %v1126_v40, 2  ;;  %v1133_v49 = vrot.slane %v1132_v41, 2 }
  0xab   : > { %v1104_v50 = vadd.f32 %v1103_v42, %v1102_v34  ;;  %v1110_v51 = vadd.f32 %v1109_v43, %v1108_v35  ;;  %v1116_v52 = vadd.f32 %v1115_v44, %v1114_v36  ;;  %v1122_v53 = vadd.f32 %v1121_v45, %v1120_v37 }
  0xac   : > { %v1093_v55 = vrot.slane %v1092_v46, 1  ;;  %v1099_v56 = vrot.slane %v1098_v47, 1  ;;  %v1128_v57 = vadd.f32 %v1127_v48, %v1126_v40  ;;  %v1134_v58 = vadd.f32 %v1133_v49, %v1132_v41 }
  0xad   : > { %v1105_v62 = vrot.slane %v1104_v50, 1  ;;  %v1111_v63 = vrot.slane %v1110_v51, 1  ;;  %v1117_v0 = vrot.slane %v1116_v52, 1  ;;  %v1123_v1 = vrot.slane %v1122_v53, 1 }
  0xae   : > { %v1094_v6 = vadd.f32 %v1093_v55, %v1092_v46  ;;  %v1100_v7 = vadd.f32 %v1099_v56, %v1098_v47  ;;  %v1129_v8 = vrot.slane %v1128_v57, 1  ;;  %v1135_v9 = vrot.slane %v1134_v58, 1 }
  0xaf   : > { %v1106_v13 = vadd.f32 %v1105_v62, %v1104_v50  ;;  %v1112_v14 = vadd.f32 %v1111_v63, %v1110_v51  ;;  %v1118_v15 = vadd.f32 %v1117_v0, %v1116_v52  ;;  %v1124_v16 = vadd.f32 %v1123_v1, %v1122_v53 }
  0xb0   : > { %v1130_v20 = vadd.f32 %v1129_v8, %v1128_v57  ;;  %v1136_v21 = vadd.f32 %v1135_v9, %v1134_v58  ;;  %v1664_v22 = vsel %vm1601_vm0, %v1100_v7, %v1094_v6  ;;  %v521_v25 = vsub.f32 %v265_v54, %v393_v5 }
  0xb1   : > { %v1665_v26 = vsel %vm1603_vm1, %v1106_v13, %v1664_v22  ;;  %v522_v27 = vsub.f32 %v266_v59, %v394_v10  ;;  %v523_v28 = vsub.f32 %v267_v60, %v395_v11  ;;  %v524_v29 = vsub.f32 %v268_v61, %v396_v12  ;;  %v277_v22 = vld [vmem:[%s2747_s0 + $0x2a0] sm:$0xff] }
  0xb2   : > { %v1666_v30 = vsel %vm1605_vm2, %v1112_v14, %v1665_v26  ;;  %v525_v31 = vsub.f32 %v269_v2, %v397_v17  ;;  %v526_v32 = vsub.f32 %v270_v3, %v398_v18  ;;  %v527_v33 = vsub.f32 %v271_v4, %v399_v19  ;;  %v273_v14 = vld [vmem:[%s2747_s0 + $0x280] sm:$0xff] }
  0xb3   : > { %v1667_v34 = vsel %vm1607_vm3, %v1118_v15, %v1666_v30  ;;  %v528_v35 = vsub.f32 %v272_v23, %v400_v24  ;;  %v649_v36 = vmul.f32 %v521_v25, %v521_v25  ;;  %v650_v37 = vmul.f32 %v522_v27, %v522_v27  ;;  %v274_v15 = vld [vmem:[%s2747_s0 + $0x288] sm:$0xff]  ;;  %v401_v30 = vld [vmem:[%s2086_s27 + $0x280] sm:$0xff] }
  0xb4   : > { %v1668_v38 = vsel %vm1609_vm4, %v1124_v16, %v1667_v34  ;;  %v651_v39 = vmul.f32 %v523_v28, %v523_v28  ;;  %v652_v40 = vmul.f32 %v524_v29, %v524_v29  ;;  %v653_v41 = vmul.f32 %v525_v31, %v525_v31  ;;  %v278_v27 = vld [vmem:[%s2747_s0 + $0x2a8] sm:$0xff]  ;;  %v279_v28 = vld [vmem:[%s2747_s0 + $0x2b0] sm:$0xff]  ;;  %v280_v29 = vld [vmem:[%s2747_s0 + $0x2b8] sm:$0xff] }
  0xb5   : > { %v1669_v42 = vsel %vm1611_vm5, %v1130_v20, %v1668_v38  ;;  %v654_v43 = vmul.f32 %v526_v32, %v526_v32  ;;  %v655_v44 = vmul.f32 %v527_v33, %v527_v33  ;;  %v656_v45 = vmul.f32 %v528_v35, %v528_v35  ;;  %v275_v20 = vld [vmem:[%s2747_s0 + $0x290] sm:$0xff]  ;;  %v402_v31 = vld [vmem:[%s2086_s27 + $0x288] sm:$0xff]  ;;  %v405_v38 = vld [vmem:[%s2086_s27 + $0x2a0] sm:$0xff] }
  0xb6   : > { %v1670_v46 = vsel %vm1613_vm6, %v1136_v21, %v1669_v42  ;;  %v1137_v47 = vrot.slane %v649_v36, 4  ;;  %v1143_v48 = vrot.slane %v650_v37, 4  ;;  %v1149_v49 = vrot.slane %v651_v39, 4  ;;  %v276_v21 = vld [vmem:[%s2747_s0 + $0x298] sm:$0xff] }
  0xb7   : > { %1752 = vadd.xlane.f32.xlu0 %v1670_v46  ;;  %v1155_v50 = vrot.slane %v652_v40, 4  ;;  %v1161_v51 = vrot.slane %v653_v41, 4  ;;  %v1167_v52 = vrot.slane %v654_v43, 4  ;;  %v1173_v53 = vrot.slane %v655_v44, 4 }
  0xb8   : > { %v1138_v54 = vadd.f32 %v1137_v47, %v649_v36  ;;  %v1144_v55 = vadd.f32 %v1143_v48, %v650_v37  ;;  %v1150_v56 = vadd.f32 %v1149_v49, %v651_v39  ;;  %v1179_v57 = vrot.slane %v656_v45, 4  ;;  %v403_v36 = vld [vmem:[%s2086_s27 + $0x290] sm:$0xff]  ;;  %v404_v37 = vld [vmem:[%s2086_s27 + $0x298] sm:$0xff] }
  0xb9   : > { %v1156_v58 = vadd.f32 %v1155_v50, %v652_v40  ;;  %v1162_v59 = vadd.f32 %v1161_v51, %v653_v41  ;;  %v1168_v60 = vadd.f32 %v1167_v52, %v654_v43  ;;  %v1174_v61 = vadd.f32 %v1173_v53, %v655_v44  ;;  %v406_v43 = vld [vmem:[%s2086_s27 + $0x2a8] sm:$0xff]  ;;  %v407_v44 = vld [vmem:[%s2086_s27 + $0x2b0] sm:$0xff] }
  0xba   : > { %v1139_v62 = vrot.slane %v1138_v54, 2  ;;  %v1145_v63 = vrot.slane %v1144_v55, 2  ;;  %v1151_v0 = vrot.slane %v1150_v56, 2  ;;  %v1180_v1 = vadd.f32 %v1179_v57, %v656_v45  ;;  %v408_v45 = vld [vmem:[%s2086_s27 + $0x2b8] sm:$0xff] }
  0xbb   : > { %v1157_v2 = vrot.slane %v1156_v58, 2  ;;  %v1163_v3 = vrot.slane %v1162_v59, 2  ;;  %v1169_v4 = vrot.slane %v1168_v60, 2  ;;  %v1175_v5 = vrot.slane %v1174_v61, 2 }
  0xbc   : > { %v1140_v6 = vadd.f32 %v1139_v62, %v1138_v54  ;;  %v1146_v7 = vadd.f32 %v1145_v63, %v1144_v55  ;;  %v1152_v8 = vadd.f32 %v1151_v0, %v1150_v56  ;;  %v1181_v9 = vrot.slane %v1180_v1, 2 }
  0xbd   : > { %v1158_v10 = vadd.f32 %v1157_v2, %v1156_v58  ;;  %v1164_v11 = vadd.f32 %v1163_v3, %v1162_v59  ;;  %v1170_v12 = vadd.f32 %v1169_v4, %v1168_v60  ;;  %v1176_v13 = vadd.f32 %v1175_v5, %v1174_v61 }
  0xbe   : > { %v1141_v16 = vrot.slane %v1140_v6, 1  ;;  %v1147_v17 = vrot.slane %v1146_v7, 1  ;;  %v1153_v18 = vrot.slane %v1152_v8, 1  ;;  %v1182_v19 = vadd.f32 %v1181_v9, %v1180_v1 }
  0xbf   : > { %v1159_v23 = vrot.slane %v1158_v10, 1  ;;  %v1165_v24 = vrot.slane %v1164_v11, 1  ;;  %v1171_v25 = vrot.slane %v1170_v12, 1  ;;  %v1177_v26 = vrot.slane %v1176_v13, 1 }
  0xc0   : > { %v1142_v32 = vadd.f32 %v1141_v16, %v1140_v6  ;;  %v1148_v33 = vadd.f32 %v1147_v17, %v1146_v7  ;;  %v1154_v34 = vadd.f32 %v1153_v18, %v1152_v8  ;;  %v1183_v35 = vrot.slane %v1182_v19, 1 }
  0xc1   : > { %v1160_v39 = vadd.f32 %v1159_v23, %v1158_v10  ;;  %v1166_v40 = vadd.f32 %v1165_v24, %v1164_v11  ;;  %v1172_v41 = vadd.f32 %v1171_v25, %v1170_v12  ;;  %v1178_v42 = vadd.f32 %v1177_v26, %v1176_v13 }
  0xc2   : > { %v1184_v46 = vadd.f32 %v1183_v35, %v1182_v19  ;;  %v1671_v47 = vsel %vm1601_vm0, %v1148_v33, %v1142_v32  ;;  %v529_v48 = vsub.f32 %v273_v14, %v401_v30  ;;  %v530_v49 = vsub.f32 %v274_v15, %v402_v31 }
  0xc3   : > { %v1672_v50 = vsel %vm1603_vm1, %v1154_v34, %v1671_v47  ;;  %v531_v51 = vsub.f32 %v275_v20, %v403_v36  ;;  %v532_v52 = vsub.f32 %v276_v21, %v404_v37  ;;  %v533_v53 = vsub.f32 %v277_v22, %v405_v38  ;;  %v281_v38 = vld [vmem:[%s2747_s0 + $0x2c0] sm:$0xff]  ;;  %v286_v47 = vld [vmem:[%s2747_s0 + $0x2e8] sm:$0xff] }
  0xc4   : > { %v1673_v54 = vsel %vm1605_vm2, %v1160_v39, %v1672_v50  ;;  %v534_v55 = vsub.f32 %v278_v27, %v406_v43  ;;  %v535_v56 = vsub.f32 %v279_v28, %v407_v44  ;;  %v536_v57 = vsub.f32 %v280_v29, %v408_v45  ;;  %v282_v39 = vld [vmem:[%s2747_s0 + $0x2c8] sm:$0xff]  ;;  %v284_v45 = vld [vmem:[%s2747_s0 + $0x2d8] sm:$0xff] }
  0xc5   : > { %v1674_v58 = vsel %vm1607_vm3, %v1166_v40, %v1673_v54  ;;  %v657_v59 = vmul.f32 %v529_v48, %v529_v48  ;;  %v658_v60 = vmul.f32 %v530_v49, %v530_v49  ;;  %v659_v61 = vmul.f32 %v531_v51, %v531_v51  ;;  %v283_v40 = vld [vmem:[%s2747_s0 + $0x2d0] sm:$0xff]  ;;  %v409_v48 = vld [vmem:[%s2086_s27 + $0x2c0] sm:$0xff]  ;;  %v410_v54 = vld [vmem:[%s2086_s27 + $0x2c8] sm:$0xff] }
  0xc6   : > { %v1675_v62 = vsel %vm1609_vm4, %v1172_v41, %v1674_v58  ;;  %v660_v63 = vmul.f32 %v532_v52, %v532_v52  ;;  %v661_v0 = vmul.f32 %v533_v53, %v533_v53  ;;  %v662_v1 = vmul.f32 %v534_v55, %v534_v55  ;;  %v287_v53 = vld [vmem:[%s2747_s0 + $0x2f0] sm:$0xff] }
  0xc7   : > { %v1676_v2 = vsel %vm1611_vm5, %v1178_v42, %v1675_v62  ;;  %v663_v3 = vmul.f32 %v535_v56, %v535_v56  ;;  %v664_v4 = vmul.f32 %v536_v57, %v536_v57  ;;  %v1185_v5 = vrot.slane %v657_v59, 4  ;;  %v411_v55 = vld [vmem:[%s2086_s27 + $0x2d0] sm:$0xff]  ;;  %v414_v62 = vld [vmem:[%s2086_s27 + $0x2e8] sm:$0xff] }
  0xc8   : > { %v1677_v6 = vsel %vm1613_vm6, %v1184_v46, %v1676_v2  ;;  %v1191_v7 = vrot.slane %v658_v60, 4  ;;  %v1197_v8 = vrot.slane %v659_v61, 4  ;;  %v1203_v9 = vrot.slane %v660_v63, 4  ;;  %v285_v46 = vld [vmem:[%s2747_s0 + $0x2e0] sm:$0xff]  ;;  %v288_v2 = vld [vmem:[%s2747_s0 + $0x2f8] sm:$0xff] }
  0xc9   : > { %1754 = vadd.xlane.f32.xlu1 %v1677_v6  ;;  %v1186_v10 = vadd.f32 %v1185_v5, %v657_v59  ;;  %v1209_v11 = vrot.slane %v661_v0, 4  ;;  %v1215_v12 = vrot.slane %v662_v1, 4  ;;  %v1221_v13 = vrot.slane %v663_v3, 4 }
  0xca   : > { %v1192_v14 = vadd.f32 %v1191_v7, %v658_v60  ;;  %v1198_v15 = vadd.f32 %v1197_v8, %v659_v61  ;;  %v1204_v16 = vadd.f32 %v1203_v9, %v660_v63  ;;  %v1227_v17 = vrot.slane %v664_v4, 4  ;;  %v412_v60 = vld [vmem:[%s2086_s27 + $0x2d8] sm:$0xff]  ;;  %v413_v61 = vld [vmem:[%s2086_s27 + $0x2e0] sm:$0xff] }
  0xcb   : > { %v1187_v18 = vrot.slane %v1186_v10, 2  ;;  %v1210_v19 = vadd.f32 %v1209_v11, %v661_v0  ;;  %v1216_v20 = vadd.f32 %v1215_v12, %v662_v1  ;;  %v1222_v21 = vadd.f32 %v1221_v13, %v663_v3  ;;  %v415_v3 = vld [vmem:[%s2086_s27 + $0x2f0] sm:$0xff] }
  0xcc   : > { %v1193_v22 = vrot.slane %v1192_v14, 2  ;;  %v1199_v23 = vrot.slane %v1198_v15, 2  ;;  %v1205_v24 = vrot.slane %v1204_v16, 2  ;;  %v1228_v25 = vadd.f32 %v1227_v17, %v664_v4  ;;  %v416_v4 = vld [vmem:[%s2086_s27 + $0x2f8] sm:$0xff] }
  0xcd   : > { %v1188_v26 = vadd.f32 %v1187_v18, %v1186_v10  ;;  %v1211_v27 = vrot.slane %v1210_v19, 2  ;;  %v1217_v28 = vrot.slane %v1216_v20, 2  ;;  %v1223_v29 = vrot.slane %v1222_v21, 2 }
  0xce   : > { %v1194_v30 = vadd.f32 %v1193_v22, %v1192_v14  ;;  %v1200_v31 = vadd.f32 %v1199_v23, %v1198_v15  ;;  %v1206_v32 = vadd.f32 %v1205_v24, %v1204_v16  ;;  %v1229_v33 = vrot.slane %v1228_v25, 2 }
  0xcf   : > { %v1189_v34 = vrot.slane %v1188_v26, 1  ;;  %v1212_v35 = vadd.f32 %v1211_v27, %v1210_v19  ;;  %v1218_v36 = vadd.f32 %v1217_v28, %v1216_v20  ;;  %v1224_v37 = vadd.f32 %v1223_v29, %v1222_v21 }
  0xd0   : > { %v1195_v41 = vrot.slane %v1194_v30, 1  ;;  %v1201_v42 = vrot.slane %v1200_v31, 1  ;;  %v1207_v43 = vrot.slane %v1206_v32, 1  ;;  %v1230_v44 = vadd.f32 %v1229_v33, %v1228_v25 }
  0xd1   : > { %v1190_v49 = vadd.f32 %v1189_v34, %v1188_v26  ;;  %v1213_v50 = vrot.slane %v1212_v35, 1  ;;  %v1219_v51 = vrot.slane %v1218_v36, 1  ;;  %v1225_v52 = vrot.slane %v1224_v37, 1 }
  0xd2   : > { %v1196_v56 = vadd.f32 %v1195_v41, %v1194_v30  ;;  %v1202_v57 = vadd.f32 %v1201_v42, %v1200_v31  ;;  %v1208_v58 = vadd.f32 %v1207_v43, %v1206_v32  ;;  %v1231_v59 = vrot.slane %v1230_v44, 1 }
  0xd3   : > { %v1214_v63 = vadd.f32 %v1213_v50, %v1212_v35  ;;  %v1220_v0 = vadd.f32 %v1219_v51, %v1218_v36  ;;  %v1226_v1 = vadd.f32 %v1225_v52, %v1224_v37  ;;  %v537_v5 = vsub.f32 %v281_v38, %v409_v48 }
  0xd4   : > { %v1232_v6 = vadd.f32 %v1231_v59, %v1230_v44  ;;  %v1678_v7 = vsel %vm1601_vm0, %v1196_v56, %v1190_v49  ;;  %v538_v8 = vsub.f32 %v282_v39, %v410_v54  ;;  %v539_v9 = vsub.f32 %v283_v40, %v411_v55 }
  0xd5   : > { %v1679_v10 = vsel %vm1603_vm1, %v1202_v57, %v1678_v7  ;;  %v540_v11 = vsub.f32 %v284_v45, %v412_v60  ;;  %v541_v12 = vsub.f32 %v285_v46, %v413_v61  ;;  %v542_v13 = vsub.f32 %v286_v47, %v414_v62  ;;  %v418_v7 = vld [vmem:[%s2086_s27 + $0x308] sm:$0xff] }
  0xd6   : > { %v1680_v14 = vsel %vm1605_vm2, %v1208_v58, %v1679_v10  ;;  %v543_v15 = vsub.f32 %v287_v53, %v415_v3  ;;  %v544_v16 = vsub.f32 %v288_v2, %v416_v4  ;;  %v665_v17 = vmul.f32 %v537_v5, %v537_v5  ;;  %v289_v58 = vld [vmem:[%s2747_s0 + $0x300] sm:$0xff] }
  0xd7   : > { %v1681_v18 = vsel %vm1607_vm3, %v1214_v63, %v1680_v14  ;;  %v666_v19 = vmul.f32 %v538_v8, %v538_v8  ;;  %v667_v20 = vmul.f32 %v539_v9, %v539_v9  ;;  %v668_v21 = vmul.f32 %v540_v11, %v540_v11  ;;  %v290_v63 = vld [vmem:[%s2747_s0 + $0x308] sm:$0xff]  ;;  %v419_v8 = vld [vmem:[%s2086_s27 + $0x310] sm:$0xff]  ;;  %v420_v14 = vld [vmem:[%s2086_s27 + $0x318] sm:$0xff] }
  0xd8   : > { %v1682_v22 = vsel %vm1609_vm4, %v1220_v0, %v1681_v18  ;;  %v669_v23 = vmul.f32 %v541_v12, %v541_v12  ;;  %v670_v24 = vmul.f32 %v542_v13, %v542_v13  ;;  %v671_v25 = vmul.f32 %v543_v15, %v543_v15  ;;  %v291_v0 = vld [vmem:[%s2747_s0 + $0x310] sm:$0xff]  ;;  %v293_v13 = vld [vmem:[%s2747_s0 + $0x320] sm:$0xff] }
  0xd9   : > { %v1683_v26 = vsel %vm1611_vm5, %v1226_v1, %v1682_v22  ;;  %v672_v27 = vmul.f32 %v544_v16, %v544_v16  ;;  %v1233_v28 = vrot.slane %v665_v17, 4  ;;  %v1239_v29 = vrot.slane %v666_v19, 4  ;;  %v417_v1 = vld [vmem:[%s2086_s27 + $0x300] sm:$0xff]  ;;  %v422_v22 = vld [vmem:[%s2086_s27 + $0x328] sm:$0xff] }
  0xda   : > { %v1684_v30 = vsel %vm1613_vm6, %v1232_v6, %v1683_v26  ;;  %v1245_v31 = vrot.slane %v667_v20, 4  ;;  %v1251_v32 = vrot.slane %v668_v21, 4  ;;  %v1257_v33 = vrot.slane %v669_v23, 4  ;;  %v292_v6 = vld [vmem:[%s2747_s0 + $0x318] sm:$0xff]  ;;  %v421_v15 = vld [vmem:[%s2086_s27 + $0x320] sm:$0xff] }
  0xdb   : > { %1756 = vadd.xlane.f32.xlu0 %v1684_v30  ;;  %v1234_v34 = vadd.f32 %v1233_v28, %v665_v17  ;;  %v1240_v35 = vadd.f32 %v1239_v29, %v666_v19  ;;  %v1263_v36 = vrot.slane %v670_v24, 4  ;;  %v1269_v37 = vrot.slane %v671_v25, 4  ;;  %v296_v26 = vld [vmem:[%s2747_s0 + $0x338] sm:$0xff] }
  0xdc   : > { %v1246_v38 = vadd.f32 %v1245_v31, %v667_v20  ;;  %v1252_v39 = vadd.f32 %v1251_v32, %v668_v21  ;;  %v1258_v40 = vadd.f32 %v1257_v33, %v669_v23  ;;  %v1275_v41 = vrot.slane %v672_v27, 4  ;;  %v294_v20 = vld [vmem:[%s2747_s0 + $0x328] sm:$0xff]  ;;  %v295_v21 = vld [vmem:[%s2747_s0 + $0x330] sm:$0xff]  ;;  %v424_v28 = vld [vmem:[%s2086_s27 + $0x338] sm:$0xff] }
  0xdd   : > { %v1235_v42 = vrot.slane %v1234_v34, 2  ;;  %v1241_v43 = vrot.slane %v1240_v35, 2  ;;  %v1264_v44 = vadd.f32 %v1263_v36, %v670_v24  ;;  %v1270_v45 = vadd.f32 %v1269_v37, %v671_v25 }
  0xde   : > { %v1247_v46 = vrot.slane %v1246_v38, 2  ;;  %v1253_v47 = vrot.slane %v1252_v39, 2  ;;  %v1259_v48 = vrot.slane %v1258_v40, 2  ;;  %v1276_v49 = vadd.f32 %v1275_v41, %v672_v27  ;;  %v423_v27 = vld [vmem:[%s2086_s27 + $0x330] sm:$0xff] }
  0xdf   : > { %v1236_v50 = vadd.f32 %v1235_v42, %v1234_v34  ;;  %v1242_v51 = vadd.f32 %v1241_v43, %v1240_v35  ;;  %v1265_v52 = vrot.slane %v1264_v44, 2  ;;  %v1271_v53 = vrot.slane %v1270_v45, 2 }
  0xe0   : > { %v1248_v54 = vadd.f32 %v1247_v46, %v1246_v38  ;;  %v1254_v55 = vadd.f32 %v1253_v47, %v1252_v39  ;;  %v1260_v56 = vadd.f32 %v1259_v48, %v1258_v40  ;;  %v1277_v57 = vrot.slane %v1276_v49, 2 }
  0xe1   : > { %v1237_v59 = vrot.slane %v1236_v50, 1  ;;  %v1243_v60 = vrot.slane %v1242_v51, 1  ;;  %v1266_v61 = vadd.f32 %v1265_v52, %v1264_v44  ;;  %v1272_v62 = vadd.f32 %v1271_v53, %v1270_v45 }
  0xe2   : > { %v1249_v2 = vrot.slane %v1248_v54, 1  ;;  %v1255_v3 = vrot.slane %v1254_v55, 1  ;;  %v1261_v4 = vrot.slane %v1260_v56, 1  ;;  %v1278_v5 = vadd.f32 %v1277_v57, %v1276_v49 }
  0xe3   : > { %v1238_v9 = vadd.f32 %v1237_v59, %v1236_v50  ;;  %v1244_v10 = vadd.f32 %v1243_v60, %v1242_v51  ;;  %v1267_v11 = vrot.slane %v1266_v61, 1  ;;  %v1273_v12 = vrot.slane %v1272_v62, 1 }
  0xe4   : > { %v1250_v16 = vadd.f32 %v1249_v2, %v1248_v54  ;;  %v1256_v17 = vadd.f32 %v1255_v3, %v1254_v55  ;;  %v1262_v18 = vadd.f32 %v1261_v4, %v1260_v56  ;;  %v1279_v19 = vrot.slane %v1278_v5, 1 }
  0xe5   : > { %v1268_v23 = vadd.f32 %v1267_v11, %v1266_v61  ;;  %v1274_v24 = vadd.f32 %v1273_v12, %v1272_v62  ;;  %v1685_v25 = vsel %vm1601_vm0, %v1244_v10, %v1238_v9  ;;  %v545_v29 = vsub.f32 %v289_v58, %v417_v1 }
  0xe6   : > { %v1280_v30 = vadd.f32 %v1279_v19, %v1278_v5  ;;  %v1686_v31 = vsel %vm1603_vm1, %v1250_v16, %v1685_v25  ;;  %v546_v32 = vsub.f32 %v290_v63, %v418_v7  ;;  %v547_v33 = vsub.f32 %v291_v0, %v419_v8  ;;  %v425_v19 = vld [vmem:[%s2086_s27 + $0x340] sm:$0xff]  ;;  %v299_v25 = vld [vmem:[%s2747_s0 + $0x350] sm:$0xff] }
  0xe7   : > { %v1687_v34 = vsel %vm1605_vm2, %v1256_v17, %v1686_v31  ;;  %v548_v35 = vsub.f32 %v292_v6, %v420_v14  ;;  %v549_v36 = vsub.f32 %v293_v13, %v421_v15  ;;  %v550_v37 = vsub.f32 %v294_v20, %v422_v22 }
  0xe8   : > { %v1688_v38 = vsel %vm1607_vm3, %v1262_v18, %v1687_v34  ;;  %v551_v39 = vsub.f32 %v295_v21, %v423_v27  ;;  %v552_v40 = vsub.f32 %v296_v26, %v424_v28  ;;  %v673_v41 = vmul.f32 %v545_v29, %v545_v29  ;;  %v297_v18 = vld [vmem:[%s2747_s0 + $0x340] sm:$0xff]  ;;  %v426_v26 = vld [vmem:[%s2086_s27 + $0x348] sm:$0xff]  ;;  %v427_v27 = vld [vmem:[%s2086_s27 + $0x350] sm:$0xff] }
  0xe9   : > { %v1689_v42 = vsel %vm1609_vm4, %v1268_v23, %v1688_v38  ;;  %v674_v43 = vmul.f32 %v546_v32, %v546_v32  ;;  %v675_v44 = vmul.f32 %v547_v33, %v547_v33  ;;  %v676_v45 = vmul.f32 %v548_v35, %v548_v35  ;;  %v300_v32 = vld [vmem:[%s2747_s0 + $0x358] sm:$0xff]  ;;  %v301_v38 = vld [vmem:[%s2747_s0 + $0x360] sm:$0xff] }
  0xea   : > { %v1690_v46 = vsel %vm1611_vm5, %v1274_v24, %v1689_v42  ;;  %v677_v47 = vmul.f32 %v549_v36, %v549_v36  ;;  %v678_v48 = vmul.f32 %v550_v37, %v550_v37  ;;  %v679_v49 = vmul.f32 %v551_v39, %v551_v39  ;;  %v298_v24 = vld [vmem:[%s2747_s0 + $0x348] sm:$0xff]  ;;  %v428_v33 = vld [vmem:[%s2086_s27 + $0x358] sm:$0xff] }
  0xeb   : > { %v1691_v50 = vsel %vm1613_vm6, %v1280_v30, %v1690_v46  ;;  %v680_v51 = vmul.f32 %v552_v40, %v552_v40  ;;  %v1281_v52 = vrot.slane %v673_v41, 4  ;;  %v1287_v53 = vrot.slane %v674_v43, 4  ;;  %v302_v39 = vld [vmem:[%s2747_s0 + $0x368] sm:$0xff]  ;;  %v429_v40 = vld [vmem:[%s2086_s27 + $0x360] sm:$0xff] }
  0xec   : > { %1758 = vadd.xlane.f32.xlu1 %v1691_v50  ;;  %v1293_v54 = vrot.slane %v675_v44, 4  ;;  %v1299_v55 = vrot.slane %v676_v45, 4  ;;  %v1305_v56 = vrot.slane %v677_v47, 4  ;;  %v1311_v57 = vrot.slane %v678_v48, 4  ;;  %v430_v46 = vld [vmem:[%s2086_s27 + $0x368] sm:$0xff] }
  0xed   : > { %v1282_v58 = vadd.f32 %v1281_v52, %v673_v41  ;;  %v1288_v59 = vadd.f32 %v1287_v53, %v674_v43  ;;  %v1317_v60 = vrot.slane %v679_v49, 4  ;;  %v1323_v61 = vrot.slane %v680_v51, 4  ;;  %v432_v52 = vld [vmem:[%s2086_s27 + $0x378] sm:$0xff] }
  0xee   : > { %v1294_v62 = vadd.f32 %v1293_v54, %v675_v44  ;;  %v1300_v63 = vadd.f32 %v1299_v55, %v676_v45  ;;  %v1306_v0 = vadd.f32 %v1305_v56, %v677_v47  ;;  %v1312_v1 = vadd.f32 %v1311_v57, %v678_v48  ;;  %v303_v45 = vld [vmem:[%s2747_s0 + $0x370] sm:$0xff] }
  0xef   : > { %v1283_v2 = vrot.slane %v1282_v58, 2  ;;  %v1289_v3 = vrot.slane %v1288_v59, 2  ;;  %v1318_v4 = vadd.f32 %v1317_v60, %v679_v49  ;;  %v1324_v5 = vadd.f32 %v1323_v61, %v680_v51  ;;  %v431_v47 = vld [vmem:[%s2086_s27 + $0x370] sm:$0xff]  ;;  %v304_v51 = vld [vmem:[%s2747_s0 + $0x378] sm:$0xff] }
  0xf0   : > { %v1295_v6 = vrot.slane %v1294_v62, 2  ;;  %v1301_v7 = vrot.slane %v1300_v63, 2  ;;  %v1307_v8 = vrot.slane %v1306_v0, 2  ;;  %v1313_v9 = vrot.slane %v1312_v1, 2 }
  0xf1   : > { %v1284_v10 = vadd.f32 %v1283_v2, %v1282_v58  ;;  %v1290_v11 = vadd.f32 %v1289_v3, %v1288_v59  ;;  %v1319_v12 = vrot.slane %v1318_v4, 2  ;;  %v1325_v13 = vrot.slane %v1324_v5, 2 }
  0xf2   : > { %v1296_v14 = vadd.f32 %v1295_v6, %v1294_v62  ;;  %v1302_v15 = vadd.f32 %v1301_v7, %v1300_v63  ;;  %v1308_v16 = vadd.f32 %v1307_v8, %v1306_v0  ;;  %v1314_v17 = vadd.f32 %v1313_v9, %v1312_v1 }
  0xf3   : > { %v1285_v20 = vrot.slane %v1284_v10, 1  ;;  %v1291_v21 = vrot.slane %v1290_v11, 1  ;;  %v1320_v22 = vadd.f32 %v1319_v12, %v1318_v4  ;;  %v1326_v23 = vadd.f32 %v1325_v13, %v1324_v5 }
  0xf4   : > { %v1297_v28 = vrot.slane %v1296_v14, 1  ;;  %v1303_v29 = vrot.slane %v1302_v15, 1  ;;  %v1309_v30 = vrot.slane %v1308_v16, 1  ;;  %v1315_v31 = vrot.slane %v1314_v17, 1 }
  0xf5   : > { %v1286_v34 = vadd.f32 %v1285_v20, %v1284_v10  ;;  %v1292_v35 = vadd.f32 %v1291_v21, %v1290_v11  ;;  %v1321_v36 = vrot.slane %v1320_v22, 1  ;;  %v1327_v37 = vrot.slane %v1326_v23, 1 }
  0xf6   : > { %v1298_v41 = vadd.f32 %v1297_v28, %v1296_v14  ;;  %v1304_v42 = vadd.f32 %v1303_v29, %v1302_v15  ;;  %v1310_v43 = vadd.f32 %v1309_v30, %v1308_v16  ;;  %v1316_v44 = vadd.f32 %v1315_v31, %v1314_v17 }
  0xf7   : > { %v1322_v48 = vadd.f32 %v1321_v36, %v1320_v22  ;;  %v1328_v49 = vadd.f32 %v1327_v37, %v1326_v23  ;;  %v1692_v50 = vsel %vm1601_vm0, %v1292_v35, %v1286_v34  ;;  %v553_v53 = vsub.f32 %v297_v18, %v425_v19 }
  0xf8   : > { %v1693_v54 = vsel %vm1603_vm1, %v1298_v41, %v1692_v50  ;;  %v554_v55 = vsub.f32 %v298_v24, %v426_v26  ;;  %v555_v56 = vsub.f32 %v299_v25, %v427_v27  ;;  %v556_v57 = vsub.f32 %v300_v32, %v428_v33  ;;  %v307_v50 = vld [vmem:[%s2747_s0 + $0x390] sm:$0xff] }
  0xf9   : > { %v1694_v58 = vsel %vm1605_vm2, %v1304_v42, %v1693_v54  ;;  %v557_v59 = vsub.f32 %v301_v38, %v429_v40  ;;  %v558_v60 = vsub.f32 %v302_v39, %v430_v46  ;;  %v559_v61 = vsub.f32 %v303_v45, %v431_v47  ;;  %v305_v42 = vld [vmem:[%s2747_s0 + $0x380] sm:$0xff]  ;;  %v434_v45 = vld [vmem:[%s2086_s27 + $0x388] sm:$0xff] }
  0xfa   : > { %v1695_v62 = vsel %vm1607_vm3, %v1310_v43, %v1694_v58  ;;  %v560_v63 = vsub.f32 %v304_v51, %v432_v52  ;;  %v681_v0 = vmul.f32 %v553_v53, %v553_v53  ;;  %v682_v1 = vmul.f32 %v554_v55, %v554_v55  ;;  %v306_v43 = vld [vmem:[%s2747_s0 + $0x388] sm:$0xff]  ;;  %v308_v51 = vld [vmem:[%s2747_s0 + $0x398] sm:$0xff]  ;;  %v435_v52 = vld [vmem:[%s2086_s27 + $0x390] sm:$0xff] }
  0xfb   : > { %v1696_v2 = vsel %vm1609_vm4, %v1316_v44, %v1695_v62  ;;  %v683_v3 = vmul.f32 %v555_v56, %v555_v56  ;;  %v684_v4 = vmul.f32 %v556_v57, %v556_v57  ;;  %v685_v5 = vmul.f32 %v557_v59, %v557_v59  ;;  %v433_v44 = vld [vmem:[%s2086_s27 + $0x380] sm:$0xff]  ;;  %v436_v53 = vld [vmem:[%s2086_s27 + $0x398] sm:$0xff] }
  0xfc   : > { %v1697_v6 = vsel %vm1611_vm5, %v1322_v48, %v1696_v2  ;;  %v686_v7 = vmul.f32 %v558_v60, %v558_v60  ;;  %v687_v8 = vmul.f32 %v559_v61, %v559_v61  ;;  %v688_v9 = vmul.f32 %v560_v63, %v560_v63  ;;  %v309_v58 = vld [vmem:[%s2747_s0 + $0x3a0] sm:$0xff]  ;;  %v438_v2 = vld [vmem:[%s2086_s27 + $0x3a8] sm:$0xff] }
  0xfd   : > { %v1698_v10 = vsel %vm1613_vm6, %v1328_v49, %v1697_v6  ;;  %v1329_v11 = vrot.slane %v681_v0, 4  ;;  %v1335_v12 = vrot.slane %v682_v1, 4  ;;  %v1341_v13 = vrot.slane %v683_v3, 4  ;;  %v437_v59 = vld [vmem:[%s2086_s27 + $0x3a0] sm:$0xff] }
  0xfe   : > { %1760 = vadd.xlane.f32.xlu0 %v1698_v10  ;;  %v1347_v14 = vrot.slane %v684_v4, 4  ;;  %v1353_v15 = vrot.slane %v685_v5, 4  ;;  %v1359_v16 = vrot.slane %v686_v7, 4  ;;  %v1365_v17 = vrot.slane %v687_v8, 4 }
  0xff   : > { %v1330_v18 = vadd.f32 %v1329_v11, %v681_v0  ;;  %v1336_v19 = vadd.f32 %v1335_v12, %v682_v1  ;;  %v1342_v20 = vadd.f32 %v1341_v13, %v683_v3  ;;  %v1371_v21 = vrot.slane %v688_v9, 4  ;;  %v310_v0 = vld [vmem:[%s2747_s0 + $0x3a8] sm:$0xff]  ;;  %v311_v1 = vld [vmem:[%s2747_s0 + $0x3b0] sm:$0xff] }
 0x100   : > { %v1348_v22 = vadd.f32 %v1347_v14, %v684_v4  ;;  %v1354_v23 = vadd.f32 %v1353_v15, %v685_v5  ;;  %v1360_v24 = vadd.f32 %v1359_v16, %v686_v7  ;;  %v1366_v25 = vadd.f32 %v1365_v17, %v687_v8  ;;  %v312_v7 = vld [vmem:[%s2747_s0 + $0x3b8] sm:$0xff]  ;;  %v439_v8 = vld [vmem:[%s2086_s27 + $0x3b0] sm:$0xff] }
 0x101   : > { %v1331_v26 = vrot.slane %v1330_v18, 2  ;;  %v1337_v27 = vrot.slane %v1336_v19, 2  ;;  %v1343_v28 = vrot.slane %v1342_v20, 2  ;;  %v1372_v29 = vadd.f32 %v1371_v21, %v688_v9  ;;  %v440_v9 = vld [vmem:[%s2086_s27 + $0x3b8] sm:$0xff] }
 0x102   : > { %v1349_v30 = vrot.slane %v1348_v22, 2  ;;  %v1355_v31 = vrot.slane %v1354_v23, 2  ;;  %v1361_v32 = vrot.slane %v1360_v24, 2  ;;  %v1367_v33 = vrot.slane %v1366_v25, 2 }
 0x103   : > { %v1332_v34 = vadd.f32 %v1331_v26, %v1330_v18  ;;  %v1338_v35 = vadd.f32 %v1337_v27, %v1336_v19  ;;  %v1344_v36 = vadd.f32 %v1343_v28, %v1342_v20  ;;  %v1373_v37 = vrot.slane %v1372_v29, 2 }
 0x104   : > { %v1350_v38 = vadd.f32 %v1349_v30, %v1348_v22  ;;  %v1356_v39 = vadd.f32 %v1355_v31, %v1354_v23  ;;  %v1362_v40 = vadd.f32 %v1361_v32, %v1360_v24  ;;  %v1368_v41 = vadd.f32 %v1367_v33, %v1366_v25 }
 0x105   : > { %v1333_v46 = vrot.slane %v1332_v34, 1  ;;  %v1339_v47 = vrot.slane %v1338_v35, 1  ;;  %v1345_v48 = vrot.slane %v1344_v36, 1  ;;  %v1374_v49 = vadd.f32 %v1373_v37, %v1372_v29 }
 0x106   : > { %v1351_v54 = vrot.slane %v1350_v38, 1  ;;  %v1357_v55 = vrot.slane %v1356_v39, 1  ;;  %v1363_v56 = vrot.slane %v1362_v40, 1  ;;  %v1369_v57 = vrot.slane %v1368_v41, 1 }
 0x107   : > { %v1334_v60 = vadd.f32 %v1333_v46, %v1332_v34  ;;  %v1340_v61 = vadd.f32 %v1339_v47, %v1338_v35  ;;  %v1346_v62 = vadd.f32 %v1345_v48, %v1344_v36  ;;  %v1375_v63 = vrot.slane %v1374_v49, 1 }
 0x108   : > { %v1352_v3 = vadd.f32 %v1351_v54, %v1350_v38  ;;  %v1358_v4 = vadd.f32 %v1357_v55, %v1356_v39  ;;  %v1364_v5 = vadd.f32 %v1363_v56, %v1362_v40  ;;  %v1370_v6 = vadd.f32 %v1369_v57, %v1368_v41 }
 0x109   : > { %v1376_v10 = vadd.f32 %v1375_v63, %v1374_v49  ;;  %v1699_v11 = vsel %vm1601_vm0, %v1340_v61, %v1334_v60  ;;  %v561_v12 = vsub.f32 %v305_v42, %v433_v44  ;;  %v562_v13 = vsub.f32 %v306_v43, %v434_v45 }
 0x10a   : > { %v1700_v14 = vsel %vm1603_vm1, %v1346_v62, %v1699_v11  ;;  %v563_v15 = vsub.f32 %v307_v50, %v435_v52  ;;  %v564_v16 = vsub.f32 %v308_v51, %v436_v53  ;;  %v565_v17 = vsub.f32 %v309_v58, %v437_v59  ;;  %v313_v62 = vld [vmem:[%s2747_s0 + $0x3c0] sm:$0xff]  ;;  %v442_v11 = vld [vmem:[%s2086_s27 + $0x3c8] sm:$0xff] }
 0x10b   : > { %v1701_v18 = vsel %vm1605_vm2, %v1352_v3, %v1700_v14  ;;  %v566_v19 = vsub.f32 %v310_v0, %v438_v2  ;;  %v567_v20 = vsub.f32 %v311_v1, %v439_v8  ;;  %v568_v21 = vsub.f32 %v312_v7, %v440_v9  ;;  %v314_v3 = vld [vmem:[%s2747_s0 + $0x3c8] sm:$0xff] }
 0x10c   : > { %v1702_v22 = vsel %vm1607_vm3, %v1358_v4, %v1701_v18  ;;  %v689_v23 = vmul.f32 %v561_v12, %v561_v12  ;;  %v690_v24 = vmul.f32 %v562_v13, %v562_v13  ;;  %v691_v25 = vmul.f32 %v563_v15, %v563_v15  ;;  %v315_v4 = vld [vmem:[%s2747_s0 + $0x3d0] sm:$0xff]  ;;  %v444_v18 = vld [vmem:[%s2086_s27 + $0x3d8] sm:$0xff] }
 0x10d   : > { %v1703_v26 = vsel %vm1609_vm4, %v1364_v5, %v1702_v22  ;;  %v692_v27 = vmul.f32 %v564_v16, %v564_v16  ;;  %v693_v28 = vmul.f32 %v565_v17, %v565_v17  ;;  %v694_v29 = vmul.f32 %v566_v19, %v566_v19  ;;  %v441_v5 = vld [vmem:[%s2086_s27 + $0x3c0] sm:$0xff]  ;;  %v443_v12 = vld [vmem:[%s2086_s27 + $0x3d0] sm:$0xff] }
 0x10e   : > { %v1704_v30 = vsel %vm1611_vm5, %v1370_v6, %v1703_v26  ;;  %v695_v31 = vmul.f32 %v567_v20, %v567_v20  ;;  %v696_v32 = vmul.f32 %v568_v21, %v568_v21  ;;  %v1377_v33 = vrot.slane %v689_v23, 4  ;;  %v317_v17 = vld [vmem:[%s2747_s0 + $0x3e0] sm:$0xff]  ;;  %v446_v26 = vld [vmem:[%s2086_s27 + $0x3e8] sm:$0xff] }
 0x10f   : > { %v1705_v34 = vsel %vm1613_vm6, %v1376_v10, %v1704_v30  ;;  %v1383_v35 = vrot.slane %v690_v24, 4  ;;  %v1389_v36 = vrot.slane %v691_v25, 4  ;;  %v1395_v37 = vrot.slane %v692_v27, 4  ;;  %v316_v10 = vld [vmem:[%s2747_s0 + $0x3d8] sm:$0xff]  ;;  %v445_v19 = vld [vmem:[%s2086_s27 + $0x3e0] sm:$0xff] }
 0x110   : > { %1762 = vadd.xlane.f32.xlu1 %v1705_v34  ;;  %v1378_v38 = vadd.f32 %v1377_v33, %v689_v23  ;;  %v1401_v39 = vrot.slane %v693_v28, 4  ;;  %v1407_v40 = vrot.slane %v694_v29, 4  ;;  %v1413_v41 = vrot.slane %v695_v31, 4  ;;  %v320_v30 = vld [vmem:[%s2747_s0 + $0x3f8] sm:$0xff] }
 0x111   : > { %v1384_v42 = vadd.f32 %v1383_v35, %v690_v24  ;;  %v1390_v43 = vadd.f32 %v1389_v36, %v691_v25  ;;  %v1396_v44 = vadd.f32 %v1395_v37, %v692_v27  ;;  %v1419_v45 = vrot.slane %v696_v32, 4  ;;  %v318_v24 = vld [vmem:[%s2747_s0 + $0x3e8] sm:$0xff]  ;;  %v319_v25 = vld [vmem:[%s2747_s0 + $0x3f0] sm:$0xff] }
 0x112   : > { %v1379_v46 = vrot.slane %v1378_v38, 2  ;;  %v1402_v47 = vadd.f32 %v1401_v39, %v693_v28  ;;  %v1408_v48 = vadd.f32 %v1407_v40, %v694_v29  ;;  %v1414_v49 = vadd.f32 %v1413_v41, %v695_v31  ;;  %v447_v31 = vld [vmem:[%s2086_s27 + $0x3f0] sm:$0xff] }
 0x113   : > { %v1385_v50 = vrot.slane %v1384_v42, 2  ;;  %v1391_v51 = vrot.slane %v1390_v43, 2  ;;  %v1397_v52 = vrot.slane %v1396_v44, 2  ;;  %v1420_v53 = vadd.f32 %v1419_v45, %v696_v32  ;;  %v448_v32 = vld [vmem:[%s2086_s27 + $0x3f8] sm:$0xff] }
 0x114   : > { %v1380_v54 = vadd.f32 %v1379_v46, %v1378_v38  ;;  %v1403_v55 = vrot.slane %v1402_v47, 2  ;;  %v1409_v56 = vrot.slane %v1408_v48, 2  ;;  %v1415_v57 = vrot.slane %v1414_v49, 2 }
 0x115   : > { %v1386_v58 = vadd.f32 %v1385_v50, %v1384_v42  ;;  %v1392_v59 = vadd.f32 %v1391_v51, %v1390_v43  ;;  %v1398_v60 = vadd.f32 %v1397_v52, %v1396_v44  ;;  %v1421_v61 = vrot.slane %v1420_v53, 2 }
 0x116   : > { %v1381_v63 = vrot.slane %v1380_v54, 1  ;;  %v1404_v0 = vadd.f32 %v1403_v55, %v1402_v47  ;;  %v1410_v1 = vadd.f32 %v1409_v56, %v1408_v48  ;;  %v1416_v2 = vadd.f32 %v1415_v57, %v1414_v49 }
 0x117   : > { %v1387_v6 = vrot.slane %v1386_v58, 1  ;;  %v1393_v7 = vrot.slane %v1392_v59, 1  ;;  %v1399_v8 = vrot.slane %v1398_v60, 1  ;;  %v1422_v9 = vadd.f32 %v1421_v61, %v1420_v53 }
 0x118   : > { %v1382_v13 = vadd.f32 %v1381_v63, %v1380_v54  ;;  %v1405_v14 = vrot.slane %v1404_v0, 1  ;;  %v1411_v15 = vrot.slane %v1410_v1, 1  ;;  %v1417_v16 = vrot.slane %v1416_v2, 1 }
 0x119   : > { %v1388_v20 = vadd.f32 %v1387_v6, %v1386_v58  ;;  %v1394_v21 = vadd.f32 %v1393_v7, %v1392_v59  ;;  %v1400_v22 = vadd.f32 %v1399_v8, %v1398_v60  ;;  %v1423_v23 = vrot.slane %v1422_v9, 1 }
 0x11a   : > { %v1406_v27 = vadd.f32 %v1405_v14, %v1404_v0  ;;  %v1412_v28 = vadd.f32 %v1411_v15, %v1410_v1  ;;  %v1418_v29 = vadd.f32 %v1417_v16, %v1416_v2  ;;  %v569_v33 = vsub.f32 %v313_v62, %v441_v5 }
 0x11b   : > { %v1424_v34 = vadd.f32 %v1423_v23, %v1422_v9  ;;  %v1706_v35 = vsel %vm1601_vm0, %v1388_v20, %v1382_v13  ;;  %v570_v36 = vsub.f32 %v314_v3, %v442_v11  ;;  %v571_v37 = vsub.f32 %v315_v4, %v443_v12 }
 0x11c   : > { %v1707_v38 = vsel %vm1603_vm1, %v1394_v21, %v1706_v35  ;;  %v572_v39 = vsub.f32 %v316_v10, %v444_v18  ;;  %v573_v40 = vsub.f32 %v317_v17, %v445_v19  ;;  %v574_v41 = vsub.f32 %v318_v24, %v446_v26 }
 0x11d   : > { %v1708_v42 = vsel %vm1605_vm2, %v1400_v22, %v1707_v38  ;;  %v575_v43 = vsub.f32 %v319_v25, %v447_v31  ;;  %v576_v44 = vsub.f32 %v320_v30, %v448_v32  ;;  %v697_v45 = vmul.f32 %v569_v33, %v569_v33 }
 0x11e   : > { %v1709_v46 = vsel %vm1607_vm3, %v1406_v27, %v1708_v42  ;;  %v698_v47 = vmul.f32 %v570_v36, %v570_v36  ;;  %v699_v48 = vmul.f32 %v571_v37, %v571_v37  ;;  %v700_v49 = vmul.f32 %v572_v39, %v572_v39 }
 0x11f   : > { %v1710_v50 = vsel %vm1609_vm4, %v1412_v28, %v1709_v46  ;;  %v701_v51 = vmul.f32 %v573_v40, %v573_v40  ;;  %v702_v52 = vmul.f32 %v574_v41, %v574_v41  ;;  %v703_v53 = vmul.f32 %v575_v43, %v575_v43 }
 0x120   : > { %v1711_v54 = vsel %vm1611_vm5, %v1418_v29, %v1710_v50  ;;  %v704_v55 = vmul.f32 %v576_v44, %v576_v44  ;;  %v1425_v56 = vrot.slane %v697_v45, 4  ;;  %v1431_v57 = vrot.slane %v698_v47, 4  ;;  %v1741_v50 = vpop.xlane.xlu1 %1740 }
 0x121   : > { %v1712_v58 = vsel %vm1613_vm6, %v1424_v34, %v1711_v54  ;;  %v1437_v59 = vrot.slane %v699_v48, 4  ;;  %v1443_v60 = vrot.slane %v700_v49, 4  ;;  %v1449_v61 = vrot.slane %v701_v51, 4 }
 0x122   : > { %1764 = vadd.xlane.f32.xlu0 %v1712_v58  ;;  %v1426_v62 = vadd.f32 %v1425_v56, %v697_v45  ;;  %v1432_v63 = vadd.f32 %v1431_v57, %v698_v47  ;;  %v1455_v0 = vrot.slane %v702_v52, 4  ;;  %v1461_v1 = vrot.slane %v703_v53, 4 }
 0x123   : > { %v1438_v2 = vadd.f32 %v1437_v59, %v699_v48  ;;  %v1444_v3 = vadd.f32 %v1443_v60, %v700_v49  ;;  %v1450_v4 = vadd.f32 %v1449_v61, %v701_v51  ;;  %v1467_v5 = vrot.slane %v704_v55, 4  ;;  %v1737_v48 = vpop.xlane.xlu0 %1736 }
 0x124   : > { %v1427_v6 = vrot.slane %v1426_v62, 2  ;;  %v1433_v7 = vrot.slane %v1432_v63, 2  ;;  %v1456_v8 = vadd.f32 %v1455_v0, %v702_v52  ;;  %v1462_v9 = vadd.f32 %v1461_v1, %v703_v53 }
 0x125   : > { %v1439_v10 = vrot.slane %v1438_v2, 2  ;;  %v1445_v11 = vrot.slane %v1444_v3, 2  ;;  %v1451_v12 = vrot.slane %v1450_v4, 2  ;;  %v1468_v13 = vadd.f32 %v1467_v5, %v704_v55  ;;  %v1743_v55 = vpop.xlane.xlu1 %1742 }
 0x126   : > { %v1428_v14 = vadd.f32 %v1427_v6, %v1426_v62  ;;  %v1434_v15 = vadd.f32 %v1433_v7, %v1432_v63  ;;  %v1457_v16 = vrot.slane %v1456_v8, 2  ;;  %v1463_v17 = vrot.slane %v1462_v9, 2 }
 0x127   : > { %v1440_v18 = vadd.f32 %v1439_v10, %v1438_v2  ;;  %v1446_v19 = vadd.f32 %v1445_v11, %v1444_v3  ;;  %v1452_v20 = vadd.f32 %v1451_v12, %v1450_v4  ;;  %v1469_v21 = vrot.slane %v1468_v13, 2  ;;  %v1739_v52 = vpop.xlane.xlu0 %1738 }
 0x128   : > { %v1429_v22 = vrot.slane %v1428_v14, 1  ;;  %v1435_v23 = vrot.slane %v1434_v15, 1  ;;  %v1458_v24 = vadd.f32 %v1457_v16, %v1456_v8  ;;  %v1464_v25 = vadd.f32 %v1463_v17, %v1462_v9 }
 0x129   : > { %v1441_v26 = vrot.slane %v1440_v18, 1  ;;  %v1447_v27 = vrot.slane %v1446_v19, 1  ;;  %v1453_v28 = vrot.slane %v1452_v20, 1  ;;  %v1470_v29 = vadd.f32 %v1469_v21, %v1468_v13  ;;  %v1747_v0 = vpop.xlane.xlu1 %1746 }
 0x12a   : > { %v1430_v30 = vadd.f32 %v1429_v22, %v1428_v14  ;;  %v1436_v31 = vadd.f32 %v1435_v23, %v1434_v15  ;;  %v1459_v32 = vrot.slane %v1458_v24, 1  ;;  %v1465_v33 = vrot.slane %v1464_v25, 1 }
 0x12b   : > { %v1442_v34 = vadd.f32 %v1441_v26, %v1440_v18  ;;  %v1448_v35 = vadd.f32 %v1447_v27, %v1446_v19  ;;  %v1454_v36 = vadd.f32 %v1453_v28, %v1452_v20  ;;  %v1471_v37 = vrot.slane %v1470_v29, 1  ;;  %v1745_v57 = vpop.xlane.xlu0 %1744 }
 0x12c   : > { %v1460_v38 = vadd.f32 %v1459_v32, %v1458_v24  ;;  %v1713_v39 = vsel %vm1601_vm0, %v1436_v31, %v1430_v30  ;;  %v1466_v40 = vadd.f32 %v1465_v33, %v1464_v25  ;;  %v1784_v49 = vlaneseq }
 0x12d   : > { %v1714_v41 = vsel %vm1603_vm1, %v1442_v34, %v1713_v39  ;;  %v1472_v42 = vadd.f32 %v1471_v37, %v1470_v29  ;;  %vm1858_vm0 = vcmask 720512   ;;  %vm1865_vm1 = vcmask 786112  }
 0x12e   : > { %v1715_v43 = vsel %vm1605_vm2, %v1448_v35, %v1714_v41  ;;  %v2697_v51 = vand.u32 127, %v1784_v49  ;;  %v2700_v54 = vshrl.u32 %v1784_v49, 7  ;;  %vm1872_vm2 = vcmask 851712  }
 0x12f   : > { %v1716_v44 = vsel %vm1607_vm3, %v1454_v36, %v1715_v43  ;;  %v1749_v3 = vpop.xlane.xlu0 %1748  ;;  %vm1879_vm3 = vcmask 917312  }
 0x130   : > { %v1717_v45 = vsel %vm1609_vm4, %v1460_v38, %v1716_v44  ;;  %v1790_v53 = vadd.s32 4294967288, %v2697_v51  ;;  %v1797_v58 = vadd.s32 4294967280, %v2697_v51  ;;  %v1788_v59 = vsub.s32 %v2697_v51, %v2700_v54 }
 0x131   : > { %v1718_v46 = vsel %vm1611_vm5, %v1466_v40, %v1717_v45  ;;  %v1804_v60 = vadd.s32 4294967272, %v2697_v51  ;;  %v1811_v63 = vadd.s32 4294967264, %v2697_v51  ;;  %v1818_v5 = vadd.s32 4294967256, %v2697_v51 }
 0x132   : > { %v1719_v47 = vsel %vm1613_vm6, %v1472_v42, %v1718_v46  ;;  %v1793_v56 = vsub.s32 %v1790_v53, %v2700_v54  ;;  %v1800_v62 = vsub.s32 %v1797_v58, %v2700_v54  ;;  %v1789_v1 = vrot.slane %v1737_v48, %v1788_v59  ;;  %v1751_v11 = vpop.xlane.xlu1 %1750 }
 0x133   : > { %1766 = vadd.xlane.f32.xlu1 %v1719_v47  ;;  %v1807_v2 = vsub.s32 %v1804_v60, %v2700_v54  ;;  %v1814_v7 = vsub.s32 %v1811_v63, %v2700_v54  ;;  %v1825_v8 = vadd.s32 4294967248, %v2697_v51  ;;  %v1821_v12 = vsub.s32 %v1818_v5, %v2700_v54 }
 0x134   : > { %v1794_v61 = vrot.slane %v1739_v52, %v1793_v56  ;;  %v1801_v6 = vrot.slane %v1741_v50, %v1800_v62  ;;  %v1832_v13 = vadd.s32 4294967240, %v2697_v51  ;;  %v1839_v17 = vadd.s32 4294967232, %v2697_v51 }
 0x135   : > { %v1808_v9 = vrot.slane %v1743_v55, %v1807_v2  ;;  %v1815_v15 = vrot.slane %v1745_v57, %v1814_v7  ;;  %v1828_v16 = vsub.s32 %v1825_v8, %v2700_v54  ;;  %v1822_v19 = vrot.slane %v1747_v0, %v1821_v12 }
 0x136   : > { %v1796_v4 = vsel %vm1795_vm7, %v1794_v61, %v1789_v1  ;;  %v1835_v20 = vsub.s32 %v1832_v13, %v2700_v54  ;;  %v1846_v21 = vadd.s32 4294967224, %v2697_v51  ;;  %v1842_v24 = vsub.s32 %v1839_v17, %v2700_v54 }
 0x137   : > { %v1803_v10 = vsel %vm1802_vm8, %v1801_v6, %v1796_v4  ;;  %v1829_v23 = vrot.slane %v1749_v3, %v1828_v16  ;;  %v1853_v26 = vadd.s32 4294967216, %v2697_v51  ;;  %v1860_v31 = vadd.s32 4294967208, %v2697_v51 }
 0x138   : > { %v1810_v18 = vsel %vm1809_vm9, %v1808_v9, %v1803_v10  ;;  %v1836_v29 = vrot.slane %v1751_v11, %v1835_v20  ;;  %v1849_v30 = vsub.s32 %v1846_v21, %v2700_v54  ;;  %v1867_v35 = vadd.s32 4294967200, %v2697_v51 }
 0x139   : > { %v1817_v22 = vsel %vm1816_vm10, %v1815_v15, %v1810_v18  ;;  %v1856_v34 = vsub.s32 %v1853_v26, %v2700_v54  ;;  %v1863_v39 = vsub.s32 %v1860_v31, %v2700_v54  ;;  %v1874_v41 = vadd.s32 4294967192, %v2697_v51 }
 0x13a   : > { %v1824_v28 = vsel %vm1823_vm11, %v1822_v19, %v1817_v22  ;;  %v1870_v44 = vsub.s32 %v1867_v35, %v2700_v54  ;;  %v1881_v45 = vadd.s32 4294967184, %v2697_v51  ;;  %v1888_v56 = vadd.s32 4294967176, %v2697_v51 }
 0x13b   : > { %v1831_v32 = vsel %vm1830_vm12, %v1829_v23, %v1824_v28  ;;  %v1877_v48 = vsub.s32 %v1874_v41, %v2700_v54  ;;  %vm1886_vm4 = vcmask 982912   ;;  %vm1893_vm5 = vcmask 1048512  }
 0x13c   : > { %v1838_v37 = vsel %vm1837_vm13, %v1836_v29, %v1831_v32  ;;  %v1884_v53 = vsub.s32 %v1881_v45, %v2700_v54  ;;  %v1891_v61 = vsub.s32 %v1888_v56, %v2700_v54 }
 0x144   : > { %v1753_v14 = vpop.xlane.xlu0 %1752 }
 0x145   : > { %v1843_v33 = vrot.slane %v1753_v14, %v1842_v24 }
 0x147   : > { %v1845_v42 = vsel %vm1844_vm14, %v1843_v33, %v1838_v37 }
 0x156   : > { %v1755_v25 = vpop.xlane.xlu1 %1754 }
 0x157   : > { %v1850_v38 = vrot.slane %v1755_v25, %v1849_v30 }
 0x159   : > { %v1852_v46 = vsel %vm1851_vm15, %v1850_v38, %v1845_v42 }
 0x168   : > { %v1757_v27 = vpop.xlane.xlu0 %1756 }
 0x169   : > { %v1857_v43 = vrot.slane %v1757_v27, %v1856_v34 }
 0x16b   : > { %v1859_v49 = vsel %vm1858_vm0, %v1857_v43, %v1852_v46 }
 0x179   : > { %v1759_v36 = vpop.xlane.xlu1 %1758 }
 0x17a   : > { %v1864_v47 = vrot.slane %v1759_v36, %v1863_v39 }
 0x17c   : > { %v1866_v57 = vsel %vm1865_vm1, %v1864_v47, %v1859_v49 }
 0x18b   : > { %v1761_v40 = vpop.xlane.xlu0 %1760 }
 0x18c   : > { %v1871_v50 = vrot.slane %v1761_v40, %v1870_v44 }
 0x18e   : > { %v1873_v59 = vsel %vm1872_vm2, %v1871_v50, %v1866_v57 }
 0x19d   : > { %v1763_v52 = vpop.xlane.xlu1 %1762 }
 0x19e   : > { %v1878_v58 = vrot.slane %v1763_v52, %v1877_v48 }
 0x1a0   : > { %v1880_v62 = vsel %vm1879_vm3, %v1878_v58, %v1873_v59 }
 0x1af   : > { %v1765_v55 = vpop.xlane.xlu0 %1764 }
 0x1b0   : > { %v1885_v60 = vrot.slane %v1765_v55, %v1884_v53 }
 0x1b2   : > { %v1887_v63 = vsel %vm1886_vm4, %v1885_v60, %v1880_v62 }
 0x1c0   : > { %v1767_v0 = vpop.xlane.xlu1 %1766 }
 0x1c1   : > { %v1892_v1 = vrot.slane %v1767_v0, %v1891_v61 }
 0x1c3   : > { %v1894_v2 = vsel %vm1893_vm5, %v1892_v1, %v1887_v63 }
 0x1c4   : > { %1896 = vst [vmem:[%s190_s21] sm:$0x1] %v1894_v2 }
 0x1c5 PF: > { %s12_s11 = sadd.s32 1, %s2030_s11   ;;  %s2750_s9 = smov %s2026_s10 }
 0x1c6   : > { %p9_p6 = scmp.ge.s32.totalorder %s12_s11, 4   ;;  %s2751_s10 = smov %s2753_s12 }
 0x1c8   :  { %11 = sbr.rel (!%p9_p6) target bundleno = 2 (0x2), region = 61 }

</bundles_post_ra>
